<compile_context>
chip_gen: v7x
topology: tpu7x:2x2x1
jax: 0.10.0
libtpu: 0.0.40
codegen_flags: <defaults>
</compile_context>

<pallas_src>
import functools

import jax
import jax.numpy as jnp
from jax import lax
from jax.experimental import pallas as pl
from jax.experimental.pallas import tpu as pltpu


def _round_up(x, m):
    return ((x + m - 1) // m) * m


# ---------------------------------------------------------------------------
# Pass 1: per-channel sum / sum-of-squares of the conv output (conv stays
# on-chip).  Grid = (shard, oc_tile, m_tile); the (8, tile_n) accumulator
# blocks are resident across the innermost M axis ("arbitrary"), initialized
# via pl.when.  Every sublane row of the accumulator holds the same running
# total (broadcast add); row 0 is read back on host per shard.
# ---------------------------------------------------------------------------
def _stats_kernel(p_ref, w_ref, sum_ref, sq_ref):
    @pl.when(pl.program_id(2) == 0)
    def _init():
        sum_ref[...] = jnp.zeros_like(sum_ref)
        sq_ref[...] = jnp.zeros_like(sq_ref)

    conv = jnp.dot(p_ref[...], w_ref[...], preferred_element_type=jnp.float32)
    # Zero-padded rows produce exactly-zero conv rows -> no effect on the stats.
    sum_ref[...] += jnp.sum(conv, axis=0, keepdims=True)
    sq_ref[...] += jnp.sum(conv * conv, axis=0, keepdims=True)


# ---------------------------------------------------------------------------
# Pass 2: recompute the conv tile on the MXU, apply folded BN (scale, shift)
# and ReLU, lane-dense store.  No f32 conv intermediate in HBM.
# ---------------------------------------------------------------------------
def _conv_bn_relu_kernel(p_ref, w_ref, scale_ref, shift_ref, o_ref):
    conv = jnp.dot(p_ref[...], w_ref[...], preferred_element_type=jnp.float32)
    y = conv * scale_ref[...] + shift_ref[...]
    o_ref[...] = jnp.maximum(y, 0.0).astype(o_ref.dtype)


def _im2col_nhwc(x_nchw, kh, kw, stride, padding):
    """Patches (N*OH*OW, KH*KW*C), built directly in the final channels-last layout."""
    n, c, h, w = x_nchw.shape
    oh = (h + 2 * padding - kh) // stride + 1
    ow = (w + 2 * padding - kw) // stride + 1
    x = jnp.transpose(x_nchw, (0, 2, 3, 1))  # NHWC
    x = jnp.pad(x, ((0, 0), (padding, padding), (padding, padding), (0, 0)))
    slabs = []
    for ki in range(kh):
        for kj in range(kw):
            slabs.append(x[:, ki:ki + stride * oh:stride, kj:kj + stride * ow:stride, :])
    patches = jnp.concatenate(slabs, axis=-1)          # (N, OH, OW, KH*KW*C)
    return patches.reshape(n * oh * ow, kh * kw * c), oh, ow


@functools.partial(
    jax.jit,
    static_argnames=("stride", "padding", "tile_m", "mxu_dtype", "channels_last_out"))
def bn_conv2d(x_nchw, weight_oihw, gamma, beta, *, stride=1, padding=0,
              eps=1e-5, tile_m=512, mxu_dtype=jnp.bfloat16,
              channels_last_out=False):
    """BN_Conv2d forward: Conv2d(bias=False) -> BatchNorm2d(batch stats) -> ReLU."""
    n, c, h, w = x_nchw.shape
    oc, _, kh, kw = weight_oihw.shape
    out_dtype = x_nchw.dtype

    patches, oh, ow = _im2col_nhwc(x_nchw, kh, kw, stride, padding)
    m, k = patches.shape

    # ----------------------- padding / tiling parameters -----------------------
    oc_pad = _round_up(oc, 128)
    k_pad = _round_up(k, 16)
    # 256-wide N blocks fill the 2x256 MXU on v6e/v7x; 128 is optimal on v5e and
    # the only option when OC_pad is not a multiple of 256.
    if oc_pad >= 256 and oc_pad % 256 == 0:
        tile_n = 256
    else:
        tile_n = 128 if oc_pad > 128 else oc_pad
    oc_tiles = oc_pad // tile_n

    in_bytes = jnp.dtype(mxu_dtype).itemsize
    out_bytes = jnp.dtype(out_dtype).itemsize

    # Big M tiles (mem-bound kernels), shrunk only if the double-buffered
    # per-step footprint would not leave VMEM headroom (v7x: 64 MiB physical).
    vmem_budget = 40 * 1024 * 1024

    def _footprint(tm):
        return (2 * tm * k_pad * in_bytes            # patches tile (x2 buffers)
                + 2 * k_pad * tile_n * in_bytes      # weight tile (x2 buffers)
                + 2 * tm * tile_n * 4                # f32 conv/output tile (x2)
                + 6 * 8 * tile_n * 4)                # stat accs + scale/shift

    tile_m_eff = min(_round_up(tile_m, 16), _round_up(m, 16))
    while tile_m_eff > 16 and _footprint(tile_m_eff) > vmem_budget:
        tile_m_eff = _round_up(tile_m_eff // 2, 16)

    m_pad = _round_up(m, tile_m_eff)
    m_tiles = m_pad // tile_m_eff
    # Two "parallel" shards of the M sweep -> v7x's two TCs each accumulate
    # partial stats; combined on host.  Neutral on single-TC v5e/v6e.
    num_shards = 2 if (m_tiles >= 2 and m_tiles % 2 == 0) else 1
    m_per_shard = m_tiles // num_shards

    # ---------------------------- operand packing -----------------------------
    patches_p = jnp.pad(patches.astype(mxu_dtype), ((0, m_pad - m), (0, k_pad - k)))
    # Weight column order must match im2col layout (ki, kj, c): OIHW -> (KH,KW,C,OC).
    w_mat = jnp.transpose(weight_oihw, (2, 3, 1, 0)).reshape(kh * kw * c, oc)
    w_p = jnp.pad(w_mat.astype(mxu_dtype), ((0, k_pad - k), (0, oc_pad - oc)))

    vmem_cap = 48 * 1024 * 1024  # headroom under v7x 64 MiB; ample on v5e/v6e

    # ------------------- pass 1: per-channel sum / sum-of-sq -------------------
    ch_sum8, ch_sq8 = pl.pallas_call(
        _stats_kernel,
        out_shape=(
            jax.ShapeDtypeStruct((num_shards * 8, oc_pad), jnp.float32),
            jax.ShapeDtypeStruct((num_shards * 8, oc_pad), jnp.float32),
        ),
        grid_spec=pltpu.PrefetchScalarGridSpec(
            num_scalar_prefetch=0,
            grid=(num_shards, oc_tiles, m_per_shard),
            in_specs=[
                pl.BlockSpec((tile_m_eff, k_pad),
                             lambda s, j, i: (s * m_per_shard + i, 0)),
                pl.BlockSpec((k_pad, tile_n), lambda s, j, i: (0, j)),
            ],
            out_specs=[
                pl.BlockSpec((8, tile_n), lambda s, j, i: (s, j)),
                pl.BlockSpec((8, tile_n), lambda s, j, i: (s, j)),
            ],
        ),
        compiler_params=pltpu.CompilerParams(
            dimension_semantics=("parallel", "parallel", "arbitrary"),
            vmem_limit_bytes=vmem_cap),
        cost_estimate=pl.CostEstimate(
            flops=2 * m_pad * k_pad * oc_pad + 3 * m_pad * oc_pad,
            transcendentals=0,
            bytes_accessed=(m_pad * k_pad * in_bytes * oc_tiles
                            + k_pad * oc_pad * in_bytes
                            + 2 * num_shards * 8 * oc_pad * 4)),
    )(patches_p, w_p)

    # -------- fold BN into per-channel scale/shift (tiny, plain JAX) --------
    ch_sum = ch_sum8.reshape(num_shards, 8, oc_pad)[:, 0, :].sum(axis=0)
    ch_sq = ch_sq8.reshape(num_shards, 8, oc_pad)[:, 0, :].sum(axis=0)
    gamma_p = jnp.pad(gamma.astype(jnp.float32), (0, oc_pad - oc))
    beta_p = jnp.pad(beta.astype(jnp.float32), (0, oc_pad - oc))
    inv_count = 1.0 / float(m)                       # true row count (padding adds 0)
    mean = ch_sum * inv_count
    var = jnp.maximum(ch_sq * inv_count - mean * mean, 0.0)   # biased batch var
    inv = lax.rsqrt(var + eps)
    scale = (gamma_p * inv).reshape(1, oc_pad)
    shift = (beta_p - mean * gamma_p * inv).reshape(1, oc_pad)

    # ---------------- pass 2: conv recompute + BN affine + ReLU ----------------
    out_flat = pl.pallas_call(
        _conv_bn_relu_kernel,
        out_shape=jax.ShapeDtypeStruct((m_pad, oc_pad), out_dtype),
        grid_spec=pltpu.PrefetchScalarGridSpec(
            num_scalar_prefetch=0,
            grid=(m_tiles, oc_tiles),
            in_specs=[
                pl.BlockSpec((tile_m_eff, k_pad), lambda i, j: (i, 0)),
                pl.BlockSpec((k_pad, tile_n), lambda i, j: (0, j)),
                pl.BlockSpec((1, tile_n), lambda i, j: (0, j)),
                pl.BlockSpec((1, tile_n), lambda i, j: (0, j)),
            ],
            out_specs=pl.BlockSpec((tile_m_eff, tile_n), lambda i, j: (i, j)),
        ),
        compiler_params=pltpu.CompilerParams(
            dimension_semantics=("parallel", "parallel"),
            vmem_limit_bytes=vmem_cap),
        cost_estimate=pl.CostEstimate(
            flops=2 * m_pad * k_pad * oc_pad + 3 * m_pad * oc_pad,
            transcendentals=0,
            bytes_accessed=(m_pad * k_pad * in_bytes * oc_tiles
                            + k_pad * oc_pad * in_bytes
                            + m_pad * oc_pad * out_bytes + 2 * oc_pad * 4)),
    )(patches_p, w_p, scale, shift)

    out_nhwc = out_flat[:m, :oc].reshape(n, oh, ow, oc)
    if channels_last_out:
        # Lane-dense NHWC result, no extra relayout pass (preferred for NHWC consumers).
        return out_nhwc
    # NCHW to match the PyTorch module's layout (costs one extra HBM pass).
    return jnp.transpose(out_nhwc, (0, 3, 1, 2))


def _reference(x, w, gamma, beta, *, stride, padding, eps=1e-5):
    conv = lax.conv_general_dilated(
        x.astype(jnp.float32), w.astype(jnp.float32),
        window_strides=(stride, stride),
        padding=((padding, padding), (padding, padding)),
        dimension_numbers=("NCHW", "OIHW", "NCHW"),
    )
    mean = jnp.mean(conv, axis=(0, 2, 3), keepdims=True)
    var = jnp.mean((conv - mean) ** 2, axis=(0, 2, 3), keepdims=True)
    y = (conv - mean) / jnp.sqrt(var + eps)
    y = y * gamma.reshape(1, -1, 1, 1) + beta.reshape(1, -1, 1, 1)
    return jnp.maximum(y, 0.0)


if __name__ == "__main__":
    key = jax.random.PRNGKey(0)
    kx, kwk = jax.random.split(key)

    # BN_Conv2d(in_channels=4, out_channels=8, kernel_size=3, stride=1, padding=1)
    N, C, H, W = 2, 4, 16, 16
    OC, KH, KW = 8, 3, 3
    stride, padding = 1, 1

    x = jax.random.normal(kx, (N, C, H, W), dtype=jnp.float32)
    fan_in = C * KH * KW
    bound = (1.0 / fan_in) ** 0.5
    wgt = jax.random.uniform(kwk, (OC, C, KH, KW), dtype=jnp.float32,
                             minval=-bound, maxval=bound)
    gamma = jnp.ones((OC,), dtype=jnp.float32)   # BatchNorm2d default init
    beta = jnp.zeros((OC,), dtype=jnp.float32)

    ref = _reference(x, wgt, gamma, beta, stride=stride, padding=padding)

    # f32 MXU path: preserves module numerics tightly (single M tile).
    out = bn_conv2d(x, wgt, gamma, beta, stride=stride, padding=padding,
                    mxu_dtype=jnp.float32)
    out = jax.block_until_ready(out)
    assert out.shape == (N, OC, H, W), out.shape
    err = float(jnp.max(jnp.abs(out - ref)))
    assert jnp.allclose(out, ref, atol=1e-3, rtol=1e-3), err

    # bf16 MXU default path; tile_m=128 -> 4 M tiles -> exercises the sharded
    # stats accumulation, pl.when init across tiles and the multi-tile pipeline.
    out_bf16 = bn_conv2d(x, wgt, gamma, beta, stride=stride, padding=padding,
                         tile_m=128, mxu_dtype=jnp.bfloat16)
    out_bf16 = jax.block_until_ready(out_bf16)
    err_bf16 = float(jnp.max(jnp.abs(out_bf16 - ref)))
    assert jnp.allclose(out_bf16, ref, atol=5e-2, rtol=5e-2), err_bf16

    print("KERNEL_OK")
</pallas_src>

<mosaic_0001>
module attributes {stable_mosaic.version = 11 : i64} {
  func.func @_stats_kernel(%arg0: i32, %arg1: i32, %arg2: i32, %arg3: memref<512x48xf32, #tpu.memory_space<vmem>>, %arg4: memref<48x128xf32, #tpu.memory_space<vmem>>, %arg5: memref<8x128xf32, #tpu.memory_space<vmem>>, %arg6: memref<8x128xf32, #tpu.memory_space<vmem>>) attributes {dimension_semantics = [#tpu.dimension_semantics<parallel>, #tpu.dimension_semantics<parallel>, #tpu.dimension_semantics<arbitrary>], iteration_bounds = array<i64: 1, 1, 1>, scalar_prefetch = 0 : i64, scratch_operands = 0 : i64, tpu.core_type = #tpu.core_type<tc>, window_params = [{transform_indices = @transform_0, window_bounds = array<i64: 512, 48>}, {transform_indices = @transform_1, window_bounds = array<i64: 48, 128>}, {transform_indices = @transform_2, window_bounds = array<i64: 8, 128>}, {transform_indices = @transform_3, window_bounds = array<i64: 8, 128>}]} {
    %c0_i32 = arith.constant 0 : i32
    %0 = arith.cmpi eq, %arg2, %c0_i32 : i32
    %1 = arith.extui %0 : i1 to i32
    %c0_i32_0 = arith.constant 0 : i32
    %2 = arith.cmpi ne, %1, %c0_i32_0 : i32
    scf.if %2 {
      %cst_14 = arith.constant 0.000000e+00 : f32
      %19 = vector.broadcast %cst_14 : f32 to vector<8x128xf32>
      %c0_15 = arith.constant 0 : index
      %c0_16 = arith.constant 0 : index
      %20 = vector.load %arg5[%c0_15, %c0_16] : memref<8x128xf32, #tpu.memory_space<vmem>>, vector<8x128xf32>
      tpu.vector_store %arg5[%c0_15, %c0_16], %19 {strides = array<i32>} : memref<8x128xf32, #tpu.memory_space<vmem>>, vector<8x128xf32>,
      %cst_17 = arith.constant 0.000000e+00 : f32
      %21 = vector.broadcast %cst_17 : f32 to vector<8x128xf32>
      %c0_18 = arith.constant 0 : index
      %c0_19 = arith.constant 0 : index
      %22 = vector.load %arg6[%c0_18, %c0_19] : memref<8x128xf32, #tpu.memory_space<vmem>>, vector<8x128xf32>
      tpu.vector_store %arg6[%c0_18, %c0_19], %21 {strides = array<i32>} : memref<8x128xf32, #tpu.memory_space<vmem>>, vector<8x128xf32>,
    } else {
    }
    %c0 = arith.constant 0 : index
    %c0_1 = arith.constant 0 : index
    %3 = vector.load %arg3[%c0, %c0_1] : memref<512x48xf32, #tpu.memory_space<vmem>>, vector<512x48xf32>
    %c0_2 = arith.constant 0 : index
    %c0_3 = arith.constant 0 : index
    %4 = vector.load %arg4[%c0_2, %c0_3] : memref<48x128xf32, #tpu.memory_space<vmem>>, vector<48x128xf32>
    %cst = arith.constant dense<0.000000e+00> : vector<512x128xf32>
    %5 = tpu.matmul %3, %4, %cst {dimension_numbers = #tpu.dot_dimension_numbers<[1], [0], [0], [1], [0, 0, 1, 1], [], []>} : vector<512x48xf32>, vector<48x128xf32>, vector<512x128xf32> -> vector<512x128xf32>
    %c0_4 = arith.constant 0 : index
    %c0_5 = arith.constant 0 : index
    %6 = vector.load %arg5[%c0_4, %c0_5] : memref<8x128xf32, #tpu.memory_space<vmem>>, vector<8x128xf32>
    %cst_6 = arith.constant dense<0.000000e+00> : vector<128xf32>
    %7 = vector.multi_reduction <add>, %5, %cst_6 [0] : vector<512x128xf32> to vector<128xf32>
    %8 = vector.shape_cast %7 : vector<128xf32> to vector<1x128xf32>
    %9 = vector.broadcast %8 : vector<1x128xf32> to vector<8x128xf32>
    %10 = arith.addf %6, %9 : vector<8x128xf32>
    %c0_7 = arith.constant 0 : index
    %c0_8 = arith.constant 0 : index
    %11 = vector.load %arg5[%c0_7, %c0_8] : memref<8x128xf32, #tpu.memory_space<vmem>>, vector<8x128xf32>
    tpu.vector_store %arg5[%c0_7, %c0_8], %10 {strides = array<i32>} : memref<8x128xf32, #tpu.memory_space<vmem>>, vector<8x128xf32>,
    %c0_9 = arith.constant 0 : index
    %c0_10 = arith.constant 0 : index
    %12 = vector.load %arg6[%c0_9, %c0_10] : memref<8x128xf32, #tpu.memory_space<vmem>>, vector<8x128xf32>
    %13 = arith.mulf %5, %5 : vector<512x128xf32>
    %cst_11 = arith.constant dense<0.000000e+00> : vector<128xf32>
    %14 = vector.multi_reduction <add>, %13, %cst_11 [0] : vector<512x128xf32> to vector<128xf32>
    %15 = vector.shape_cast %14 : vector<128xf32> to vector<1x128xf32>
    %16 = vector.broadcast %15 : vector<1x128xf32> to vector<8x128xf32>
    %17 = arith.addf %12, %16 : vector<8x128xf32>
    %c0_12 = arith.constant 0 : index
    %c0_13 = arith.constant 0 : index
    %18 = vector.load %arg6[%c0_12, %c0_13] : memref<8x128xf32, #tpu.memory_space<vmem>>, vector<8x128xf32>
    tpu.vector_store %arg6[%c0_12, %c0_13], %17 {strides = array<i32>} : memref<8x128xf32, #tpu.memory_space<vmem>>, vector<8x128xf32>,
    return
  }
  func.func @transform_0(%arg0: i32, %arg1: i32, %arg2: i32) -> (i32, i32) {
    %c1_i32 = arith.constant 1 : i32
    %0 = arith.muli %arg0, %c1_i32 : i32
    %1 = arith.addi %0, %arg2 : i32
    %c0_i32 = arith.constant 0 : i32
    %c0_i32_0 = arith.constant 0 : i32
    return %1, %c0_i32 : i32, i32
  }
  func.func @transform_1(%arg0: i32, %arg1: i32, %arg2: i32) -> (i32, i32) {
    %c0_i32 = arith.constant 0 : i32
    %c0_i32_0 = arith.constant 0 : i32
    return %c0_i32, %arg1 : i32, i32
  }
  func.func @transform_2(%arg0: i32, %arg1: i32, %arg2: i32) -> (i32, i32) {
    %c0_i32 = arith.constant 0 : i32
    return %arg0, %arg1 : i32, i32
  }
  func.func @transform_3(%arg0: i32, %arg1: i32, %arg2: i32) -> (i32, i32) {
    %c0_i32 = arith.constant 0 : i32
    return %arg0, %arg1 : i32, i32
  }
}

module attributes {stable_mosaic.version = 11 : i64} {
  func.func @_conv_bn_relu_kernel(%arg0: i32, %arg1: i32, %arg2: memref<512x48xf32, #tpu.memory_space<vmem>>, %arg3: memref<48x128xf32, #tpu.memory_space<vmem>>, %arg4: memref<1x128xf32, #tpu.memory_space<vmem>>, %arg5: memref<1x128xf32, #tpu.memory_space<vmem>>, %arg6: memref<512x128xf32, #tpu.memory_space<vmem>>) attributes {dimension_semantics = [#tpu.dimension_semantics<parallel>, #tpu.dimension_semantics<parallel>], iteration_bounds = array<i64: 1, 1>, scalar_prefetch = 0 : i64, scratch_operands = 0 : i64, tpu.core_type = #tpu.core_type<tc>, window_params = [{transform_indices = @transform_0, window_bounds = array<i64: 512, 48>}, {transform_indices = @transform_1, window_bounds = array<i64: 48, 128>}, {transform_indices = @transform_2, window_bounds = array<i64: 1, 128>}, {transform_indices = @transform_3, window_bounds = array<i64: 1, 128>}, {transform_indices = @transform_4, window_bounds = array<i64: 512, 128>}]} {
    %c0 = arith.constant 0 : index
    %c0_0 = arith.constant 0 : index
    %0 = vector.load %arg2[%c0, %c0_0] : memref<512x48xf32, #tpu.memory_space<vmem>>, vector<512x48xf32>
    %c0_1 = arith.constant 0 : index
    %c0_2 = arith.constant 0 : index
    %1 = vector.load %arg3[%c0_1, %c0_2] : memref<48x128xf32, #tpu.memory_space<vmem>>, vector<48x128xf32>
    %cst = arith.constant dense<0.000000e+00> : vector<512x128xf32>
    %2 = tpu.matmul %0, %1, %cst {dimension_numbers = #tpu.dot_dimension_numbers<[1], [0], [0], [1], [0, 0, 1, 1], [], []>} : vector<512x48xf32>, vector<48x128xf32>, vector<512x128xf32> -> vector<512x128xf32>
    %c0_3 = arith.constant 0 : index
    %c0_4 = arith.constant 0 : index
    %3 = vector.load %arg4[%c0_3, %c0_4] : memref<1x128xf32, #tpu.memory_space<vmem>>, vector<1x128xf32>
    %4 = vector.broadcast %3 : vector<1x128xf32> to vector<512x128xf32>
    %5 = arith.mulf %2, %4 : vector<512x128xf32>
    %c0_5 = arith.constant 0 : index
    %c0_6 = arith.constant 0 : index
    %6 = vector.load %arg5[%c0_5, %c0_6] : memref<1x128xf32, #tpu.memory_space<vmem>>, vector<1x128xf32>
    %7 = vector.broadcast %6 : vector<1x128xf32> to vector<512x128xf32>
    %8 = arith.addf %5, %7 : vector<512x128xf32>
    %cst_7 = arith.constant 0.000000e+00 : f32
    %9 = vector.broadcast %cst_7 : f32 to vector<512x128xf32>
    %10 = arith.maximumf %8, %9 : vector<512x128xf32>
    %c0_8 = arith.constant 0 : index
    %c0_9 = arith.constant 0 : index
    %11 = vector.load %arg6[%c0_8, %c0_9] : memref<512x128xf32, #tpu.memory_space<vmem>>, vector<512x128xf32>
    tpu.vector_store %arg6[%c0_8, %c0_9], %10 {strides = array<i32>} : memref<512x128xf32, #tpu.memory_space<vmem>>, vector<512x128xf32>,
    return
  }
  func.func @transform_0(%arg0: i32, %arg1: i32) -> (i32, i32) {
    %c0_i32 = arith.constant 0 : i32
    %c0_i32_0 = arith.constant 0 : i32
    return %arg0, %c0_i32 : i32, i32
  }
  func.func @transform_1(%arg0: i32, %arg1: i32) -> (i32, i32) {
    %c0_i32 = arith.constant 0 : i32
    %c0_i32_0 = arith.constant 0 : i32
    return %c0_i32, %arg1 : i32, i32
  }
  func.func @transform_2(%arg0: i32, %arg1: i32) -> (i32, i32) {
    %c0_i32 = arith.constant 0 : i32
    %c0_i32_0 = arith.constant 0 : i32
    return %c0_i32, %arg1 : i32, i32
  }
  func.func @transform_3(%arg0: i32, %arg1: i32) -> (i32, i32) {
    %c0_i32 = arith.constant 0 : i32
    %c0_i32_0 = arith.constant 0 : i32
    return %c0_i32, %arg1 : i32, i32
  }
  func.func @transform_4(%arg0: i32, %arg1: i32) -> (i32, i32) {
    %c0_i32 = arith.constant 0 : i32
    return %arg0, %arg1 : i32, i32
  }
}

</mosaic_0001>

<bundles_post_ra>
// kernel: bn_conv2d.2
= control target key start
LH: loop header
LB: loop body
LE: loop exit
PB: predicated region body
PF: predicated region fallthrough
CT: control target
= control target key end

     0   :  { %vm111_vm0 = vcmask 392192   ;;  %s1632_s1 = inlined_call_operand.vmem [shape: f32[48,128], index: 1, kind: input, shape index: {}]   ;;  %s1633_s0 = inlined_call_operand.vmem [shape: f32[512,48], index: 0, kind: input, shape index: {}]   ;;  %s1634_s2 = inlined_call_operand.vmem [shape: f32[8,128], index: 2, kind: output, shape index: {0}]   ;;  %s1635_s3 = inlined_call_operand.vmem [shape: f32[8,128], index: 3, kind: output, shape index: {1}]  }
   0x1   :  { %v105_v0 = vld [vmem:[%s1632_s1] sm:$0xff]  ;;  %v106_v1 = vld [vmem:[%s1632_s1 + $0x8] sm:$0xff]  ;;  %v107_v2 = vld [vmem:[%s1632_s1 + $0x10] sm:$0xff] }
   0x2   :  { %v1153_v3 = vpack.c.bf16 %v106_v1, %v105_v0  ;;  %v108_v4 = vld [vmem:[%s1632_s1 + $0x18] sm:$0xff]  ;;  %v109_v6 = vld [vmem:[%s1632_s1 + $0x20] sm:$0xff]  ;;  %v110_v7 = vld [vmem:[%s1632_s1 + $0x28] sm:$0xff] }
   0x3   :  { %v1157_v5 = vpack.c.bf16 %v108_v4, %v107_v2  ;;  %v41_v8 = vld [vmem:[%s1633_s0] sm:$0xff]  ;;  %v1161_v9 = vpack.c.bf16 %v110_v7, %v109_v6  ;;  %v42_v10 = vld [vmem:[%s1633_s0 + $0x8] sm:$0xff]  ;;  %v43_v12 = vld [vmem:[%s1633_s0 + $0x10] sm:$0xff] }
   0x4   :  { %1154 = vmatprep.subr.bf16.mxu0 %v1153_v3  ;;  %1057 = vmatprep.mubr.msk.f32.mxu0 %vm111_vm0, %v41_v8  ;;  %v73_v11 = vld [vmem:[%s1633_s0 + $0x100] sm:$0xff]  ;;  %v74_v13 = vld [vmem:[%s1633_s0 + $0x108] sm:$0xff]  ;;  %v75_v14 = vld [vmem:[%s1633_s0 + $0x110] sm:$0xff] }
   0x5   :  { %1156 = vmatpush3.bf16.msra.mxu0 %v1153_v3  ;;  %1165 = vmatprep.subr.bf16.mxu1 %v1153_v3  ;;  %v44_v15 = vld [vmem:[%s1633_s0 + $0x18] sm:$0xff]  ;;  %v45_v16 = vld [vmem:[%s1633_s0 + $0x20] sm:$0xff]  ;;  %v46_v19 = vld [vmem:[%s1633_s0 + $0x28] sm:$0xff] }
   0x6   :  { %1158 = vmatprep.subr.bf16.mxu0 %v1157_v5  ;;  %1168 = vmatpush3.bf16.msra.mxu1 %v1153_v3  ;;  %v76_v17 = vld [vmem:[%s1633_s0 + $0x118] sm:$0xff]  ;;  %v77_v18 = vld [vmem:[%s1633_s0 + $0x120] sm:$0xff]  ;;  %v47_v20 = vld [vmem:[%s1633_s0 + $0x30] sm:$0xff] }
   0x7   :  { %1166 = vmatprep.subr.bf16.mxu1 %v1157_v5  ;;  %1105 = vmatprep.mubr.msk.f32.mxu1 %vm111_vm0, %v73_v11  ;;  %v78_v21 = vld [vmem:[%s1633_s0 + $0x128] sm:$0xff]  ;;  %v79_v22 = vld [vmem:[%s1633_s0 + $0x130] sm:$0xff]  ;;  %v48_v23 = vld [vmem:[%s1633_s0 + $0x38] sm:$0xff] }
   0x8   :  { %v49_v24 = vld [vmem:[%s1633_s0 + $0x40] sm:$0xff]  ;;  %v80_v25 = vld [vmem:[%s1633_s0 + $0x138] sm:$0xff]  ;;  %v50_v27 = vld [vmem:[%s1633_s0 + $0x48] sm:$0xff] }
   0x9   :  { %1160 = vmatpush3.bf16.msra.mxu0 %v1157_v5  ;;  %v81_v26 = vld [vmem:[%s1633_s0 + $0x140] sm:$0xff]  ;;  %v51_v28 = vld [vmem:[%s1633_s0 + $0x50] sm:$0xff]  ;;  %v82_v29 = vld [vmem:[%s1633_s0 + $0x148] sm:$0xff] }
   0xa   :  { %1162 = vmatprep.subr.bf16.mxu0 %v1161_v9  ;;  %1169 = vmatpush3.bf16.msra.mxu1 %v1157_v5  ;;  %v83_v30 = vld [vmem:[%s1633_s0 + $0x150] sm:$0xff]  ;;  %v52_v31 = vld [vmem:[%s1633_s0 + $0x58] sm:$0xff]  ;;  %v53_v32 = vld [vmem:[%s1633_s0 + $0x60] sm:$0xff] }
   0xb   :  { %1167 = vmatprep.subr.bf16.mxu1 %v1161_v9  ;;  %v84_v33 = vld [vmem:[%s1633_s0 + $0x158] sm:$0xff]  ;;  %v85_v34 = vld [vmem:[%s1633_s0 + $0x160] sm:$0xff]  ;;  %v54_v35 = vld [vmem:[%s1633_s0 + $0x68] sm:$0xff] }
   0xc   :  { %v55_v36 = vld [vmem:[%s1633_s0 + $0x70] sm:$0xff]  ;;  %v86_v37 = vld [vmem:[%s1633_s0 + $0x168] sm:$0xff]  ;;  %v56_v39 = vld [vmem:[%s1633_s0 + $0x78] sm:$0xff] }
   0xd   :  { %1164 = vmatpush3.bf16.msra.mxu0 %v1161_v9  ;;  %v87_v38 = vld [vmem:[%s1633_s0 + $0x170] sm:$0xff]  ;;  %v57_v40 = vld [vmem:[%s1633_s0 + $0x80] sm:$0xff]  ;;  %v88_v41 = vld [vmem:[%s1633_s0 + $0x178] sm:$0xff] }
   0xe   :  { %1170 = vmatpush3.bf16.msra.mxu1 %v1161_v9  ;;  %v89_v42 = vld [vmem:[%s1633_s0 + $0x180] sm:$0xff]  ;;  %v58_v43 = vld [vmem:[%s1633_s0 + $0x88] sm:$0xff]  ;;  %v59_v44 = vld [vmem:[%s1633_s0 + $0x90] sm:$0xff] }
   0xf   :  { %v90_v45 = vld [vmem:[%s1633_s0 + $0x188] sm:$0xff]  ;;  %v91_v46 = vld [vmem:[%s1633_s0 + $0x190] sm:$0xff]  ;;  %v60_v47 = vld [vmem:[%s1633_s0 + $0x98] sm:$0xff] }
  0x10   :  { %1058 = vmatmul.mubr.msk.f32.vlgmr.msra.gmra.mrb[0].mxu0 %vm111_vm0, %v42_v10  ;;  %v61_v48 = vld [vmem:[%s1633_s0 + $0xa0] sm:$0xff]  ;;  %v92_v49 = vld [vmem:[%s1633_s0 + $0x198] sm:$0xff]  ;;  %v62_v51 = vld [vmem:[%s1633_s0 + $0xa8] sm:$0xff] }
  0x11   :  { %1060 = vmatprep.mubr.msk.f32.mxu0 %vm111_vm0, %v43_v12  ;;  %1106 = vmatmul.mubr.msk.f32.vlgmr.msra.gmra.mrb[0].mxu1 %vm111_vm0, %v74_v13  ;;  %v93_v50 = vld [vmem:[%s1633_s0 + $0x1a0] sm:$0xff]  ;;  %v63_v52 = vld [vmem:[%s1633_s0 + $0xb0] sm:$0xff]  ;;  %v94_v53 = vld [vmem:[%s1633_s0 + $0x1a8] sm:$0xff] }
  0x12   :  { %1108 = vmatprep.mubr.msk.f32.mxu1 %vm111_vm0, %v75_v14  ;;  %v95_v54 = vld [vmem:[%s1633_s0 + $0x1b0] sm:$0xff]  ;;  %v64_v55 = vld [vmem:[%s1633_s0 + $0xb8] sm:$0xff]  ;;  %v65_v56 = vld [vmem:[%s1633_s0 + $0xc0] sm:$0xff] }
  0x13   :  { %v96_v57 = vld [vmem:[%s1633_s0 + $0x1b8] sm:$0xff]  ;;  %v97_v58 = vld [vmem:[%s1633_s0 + $0x1c0] sm:$0xff]  ;;  %v66_v59 = vld [vmem:[%s1633_s0 + $0xc8] sm:$0xff] }
  0x14   :  { %1061 = vmatmul.mubr.msk.f32.gmra.mrb[2].mxu0 %vm111_vm0, %v44_v15  ;;  %v67_v60 = vld [vmem:[%s1633_s0 + $0xd0] sm:$0xff]  ;;  %v98_v61 = vld [vmem:[%s1633_s0 + $0x1c8] sm:$0xff]  ;;  %v68_v63 = vld [vmem:[%s1633_s0 + $0xd8] sm:$0xff] }
  0x15   :  { %1063 = vmatprep.mubr.msk.f32.mxu0 %vm111_vm0, %v45_v16  ;;  %1109 = vmatmul.mubr.msk.f32.gmra.mrb[2].mxu1 %vm111_vm0, %v76_v17  ;;  %v99_v62 = vld [vmem:[%s1633_s0 + $0x1d0] sm:$0xff]  ;;  %v69_v0 = vld [vmem:[%s1633_s0 + $0xe0] sm:$0xff]  ;;  %v100_v1 = vld [vmem:[%s1633_s0 + $0x1d8] sm:$0xff] }
  0x16   :  { %1111 = vmatprep.mubr.msk.f32.mxu1 %vm111_vm0, %v77_v18  ;;  %v101_v2 = vld [vmem:[%s1633_s0 + $0x1e0] sm:$0xff]  ;;  %v70_v3 = vld [vmem:[%s1633_s0 + $0xe8] sm:$0xff]  ;;  %v71_v4 = vld [vmem:[%s1633_s0 + $0xf0] sm:$0xff] }
  0x17   :  { %v102_v5 = vld [vmem:[%s1633_s0 + $0x1e8] sm:$0xff]  ;;  %v103_v6 = vld [vmem:[%s1633_s0 + $0x1f0] sm:$0xff]  ;;  %v72_v7 = vld [vmem:[%s1633_s0 + $0xf8] sm:$0xff] }
  0x18   :  { %1064 = vmatmul.mubr.msk.f32.gmra.mrb[4].mxu0 %vm111_vm0, %v46_v19  ;;  %v104_v8 = vld [vmem:[%s1633_s0 + $0x1f8] sm:$0xff] }
  0x19   :  { %1066 = vmatprep.mubr.msk.f32.mxu0 %vm111_vm0, %v47_v20  ;;  %1112 = vmatmul.mubr.msk.f32.gmra.mrb[4].mxu1 %vm111_vm0, %v78_v21 }
  0x1a   :  { %1114 = vmatprep.mubr.msk.f32.mxu1 %vm111_vm0, %v79_v22 }
  0x1c   :  { %1067 = vmatmul.mubr.msk.f32.gmra.mrb[6].mxu0 %vm111_vm0, %v48_v23 }
  0x1d   :  { %1069 = vmatprep.mubr.msk.f32.mxu0 %vm111_vm0, %v49_v24  ;;  %1115 = vmatmul.mubr.msk.f32.gmra.mrb[6].mxu1 %vm111_vm0, %v80_v25 }
  0x1e   :  { %1117 = vmatprep.mubr.msk.f32.mxu1 %vm111_vm0, %v81_v26 }
  0x20   :  { %1070 = vmatmul.mubr.msk.f32.gmra.mrb[8].mxu0 %vm111_vm0, %v50_v27 }
  0x21   :  { %1072 = vmatprep.mubr.msk.f32.mxu0 %vm111_vm0, %v51_v28  ;;  %1118 = vmatmul.mubr.msk.f32.gmra.mrb[8].mxu1 %vm111_vm0, %v82_v29 }
  0x22   :  { %1120 = vmatprep.mubr.msk.f32.mxu1 %vm111_vm0, %v83_v30 }
  0x24   :  { %1073 = vmatmul.mubr.msk.f32.gmra.mrb[10].mxu0 %vm111_vm0, %v52_v31 }
  0x25   :  { %1075 = vmatprep.mubr.msk.f32.mxu0 %vm111_vm0, %v53_v32  ;;  %1121 = vmatmul.mubr.msk.f32.gmra.mrb[10].mxu1 %vm111_vm0, %v84_v33 }
  0x26   :  { %1123 = vmatprep.mubr.msk.f32.mxu1 %vm111_vm0, %v85_v34 }
  0x28   :  { %1076 = vmatmul.mubr.msk.f32.gmra.mrb[12].mxu0 %vm111_vm0, %v54_v35 }
  0x29   :  { %1078 = vmatprep.mubr.msk.f32.mxu0 %vm111_vm0, %v55_v36  ;;  %1124 = vmatmul.mubr.msk.f32.gmra.mrb[12].mxu1 %vm111_vm0, %v86_v37 }
  0x2a   :  { %1126 = vmatprep.mubr.msk.f32.mxu1 %vm111_vm0, %v87_v38 }
  0x2c   :  { %1079 = vmatmul.mubr.msk.f32.gmra.mrb[14].mxu0 %vm111_vm0, %v56_v39 }
  0x2d   :  { %1081 = vmatprep.mubr.msk.f32.mxu0 %vm111_vm0, %v57_v40  ;;  %1127 = vmatmul.mubr.msk.f32.gmra.mrb[14].mxu1 %vm111_vm0, %v88_v41 }
  0x2e   :  { %1129 = vmatprep.mubr.msk.f32.mxu1 %vm111_vm0, %v89_v42 }
  0x30   :  { %1082 = vmatmul.mubr.msk.f32.gmra.mrb[16].mxu0 %vm111_vm0, %v58_v43 }
  0x31   :  { %1084 = vmatprep.mubr.msk.f32.mxu0 %vm111_vm0, %v59_v44  ;;  %1130 = vmatmul.mubr.msk.f32.gmra.mrb[16].mxu1 %vm111_vm0, %v90_v45 }
  0x32   :  { %1132 = vmatprep.mubr.msk.f32.mxu1 %vm111_vm0, %v91_v46 }
  0x34   :  { %1085 = vmatmul.mubr.msk.f32.gmra.mrb[18].mxu0 %vm111_vm0, %v60_v47 }
  0x35   :  { %1087 = vmatprep.mubr.msk.f32.mxu0 %vm111_vm0, %v61_v48  ;;  %1133 = vmatmul.mubr.msk.f32.gmra.mrb[18].mxu1 %vm111_vm0, %v92_v49 }
  0x36   :  { %1135 = vmatprep.mubr.msk.f32.mxu1 %vm111_vm0, %v93_v50 }
  0x38   :  { %1088 = vmatmul.mubr.msk.f32.gmra.mrb[20].mxu0 %vm111_vm0, %v62_v51 }
  0x39   :  { %1090 = vmatprep.mubr.msk.f32.mxu0 %vm111_vm0, %v63_v52  ;;  %1136 = vmatmul.mubr.msk.f32.gmra.mrb[20].mxu1 %vm111_vm0, %v94_v53 }
  0x3a   :  { %1138 = vmatprep.mubr.msk.f32.mxu1 %vm111_vm0, %v95_v54 }
  0x3c   :  { %1091 = vmatmul.mubr.msk.f32.gmra.mrb[22].mxu0 %vm111_vm0, %v64_v55 }
  0x3d   :  { %1093 = vmatprep.mubr.msk.f32.mxu0 %vm111_vm0, %v65_v56  ;;  %1139 = vmatmul.mubr.msk.f32.gmra.mrb[22].mxu1 %vm111_vm0, %v96_v57 }
  0x3e   :  { %1141 = vmatprep.mubr.msk.f32.mxu1 %vm111_vm0, %v97_v58 }
  0x40   :  { %1094 = vmatmul.mubr.msk.f32.gmra.mrb[24].mxu0 %vm111_vm0, %v66_v59 }
  0x41   :  { %1096 = vmatprep.mubr.msk.f32.mxu0 %vm111_vm0, %v67_v60  ;;  %1142 = vmatmul.mubr.msk.f32.gmra.mrb[24].mxu1 %vm111_vm0, %v98_v61 }
  0x42   :  { %1144 = vmatprep.mubr.msk.f32.mxu1 %vm111_vm0, %v99_v62 }
  0x44   :  { %1097 = vmatmul.mubr.msk.f32.gmra.mrb[26].mxu0 %vm111_vm0, %v68_v63 }
  0x45   :  { %1099 = vmatprep.mubr.msk.f32.mxu0 %vm111_vm0, %v69_v0  ;;  %1145 = vmatmul.mubr.msk.f32.gmra.mrb[26].mxu1 %vm111_vm0, %v100_v1 }
  0x46   :  { %1147 = vmatprep.mubr.msk.f32.mxu1 %vm111_vm0, %v101_v2 }
  0x48   :  { %1100 = vmatmul.mubr.msk.f32.gmra.mrb[28].mxu0 %vm111_vm0, %v70_v3 }
  0x49   :  { %1102 = vmatprep.mubr.msk.f32.mxu0 %vm111_vm0, %v71_v4  ;;  %1148 = vmatmul.mubr.msk.f32.gmra.mrb[28].mxu1 %vm111_vm0, %v102_v5 }
  0x4a   :  { %1150 = vmatprep.mubr.msk.f32.mxu1 %vm111_vm0, %v103_v6 }
  0x4c   :  { %1103 = vmatmul.mubr.msk.f32.gmra.mrb[30].mxu0 %vm111_vm0, %v72_v7 }
  0x4d   :  { %1151 = vmatmul.mubr.msk.f32.gmra.mrb[30].mxu1 %vm111_vm0, %v104_v8 }
  0xe3   :  { %v1059_v9 = vpop.f32.mrb[0].mxu0 }
  0xe4   :  { %v763_v10 = vmul.f32 %v1059_v9, %v1059_v9  ;;  %v370_v11 = vpop.f32.mrb[1].mxu0  ;;  %v1466_v12 = vpop.f32.mrb[0].mxu1 }
  0xe5   :  { %v690_v13 = vadd.f32 %v1059_v9, %v370_v11  ;;  %v762_v14 = vmul.f32 %v370_v11, %v370_v11  ;;  %v1468_v15 = vpop.f32.mrb[1].mxu1 }
  0xe7   :  { %v826_v16 = vadd.f32 %v763_v10, %v762_v14  ;;  %v1062_v17 = vpop.f32.mrb[2].mxu0 }
  0xe8   :  { %v380_v18 = vpop.f32.mrb[3].mxu0  ;;  %v1470_v19 = vpop.f32.mrb[2].mxu1  ;;  %v765_v23 = vmul.f32 %v1062_v17, %v1062_v17 }
  0xe9   :  { %v691_v20 = vadd.f32 %v690_v13, %v380_v18  ;;  %v764_v21 = vmul.f32 %v380_v18, %v380_v18  ;;  %v1472_v22 = vpop.f32.mrb[3].mxu1 }
  0xeb   :  { %v827_v24 = vadd.f32 %v826_v16, %v764_v21  ;;  %v1065_v25 = vpop.f32.mrb[4].mxu0  ;;  %v692_v26 = vadd.f32 %v1062_v17, %v691_v20 }
  0xec   :  { %v390_v27 = vpop.f32.mrb[5].mxu0  ;;  %v1474_v28 = vpop.f32.mrb[4].mxu1  ;;  %v767_v33 = vmul.f32 %v1065_v25, %v1065_v25 }
  0xed   :  { %v693_v29 = vadd.f32 %v692_v26, %v390_v27  ;;  %v766_v30 = vmul.f32 %v390_v27, %v390_v27  ;;  %v828_v31 = vadd.f32 %v827_v24, %v765_v23  ;;  %v1476_v32 = vpop.f32.mrb[5].mxu1 }
  0xef   :  { %v829_v34 = vadd.f32 %v828_v31, %v766_v30  ;;  %v1068_v35 = vpop.f32.mrb[6].mxu0  ;;  %v694_v36 = vadd.f32 %v1065_v25, %v693_v29 }
  0xf0   :  { %v400_v37 = vpop.f32.mrb[7].mxu0  ;;  %v1478_v38 = vpop.f32.mrb[6].mxu1  ;;  %v769_v43 = vmul.f32 %v1068_v35, %v1068_v35 }
  0xf1   :  { %v695_v39 = vadd.f32 %v694_v36, %v400_v37  ;;  %v768_v40 = vmul.f32 %v400_v37, %v400_v37  ;;  %v830_v41 = vadd.f32 %v829_v34, %v767_v33  ;;  %v1480_v42 = vpop.f32.mrb[7].mxu1 }
  0xf3   :  { %v831_v44 = vadd.f32 %v830_v41, %v768_v40  ;;  %v1071_v45 = vpop.f32.mrb[8].mxu0  ;;  %v696_v46 = vadd.f32 %v1068_v35, %v695_v39 }
  0xf4   :  { %v410_v47 = vpop.f32.mrb[9].mxu0  ;;  %v1482_v48 = vpop.f32.mrb[8].mxu1  ;;  %v771_v53 = vmul.f32 %v1071_v45, %v1071_v45 }
  0xf5   :  { %v697_v49 = vadd.f32 %v696_v46, %v410_v47  ;;  %v770_v50 = vmul.f32 %v410_v47, %v410_v47  ;;  %v832_v51 = vadd.f32 %v831_v44, %v769_v43  ;;  %v1484_v52 = vpop.f32.mrb[9].mxu1 }
  0xf7   :  { %v833_v54 = vadd.f32 %v832_v51, %v770_v50  ;;  %v1074_v55 = vpop.f32.mrb[10].mxu0  ;;  %v698_v56 = vadd.f32 %v1071_v45, %v697_v49 }
  0xf8   :  { %v420_v57 = vpop.f32.mrb[11].mxu0  ;;  %v1486_v58 = vpop.f32.mrb[10].mxu1  ;;  %v773_v63 = vmul.f32 %v1074_v55, %v1074_v55 }
  0xf9   :  { %v699_v59 = vadd.f32 %v698_v56, %v420_v57  ;;  %v772_v60 = vmul.f32 %v420_v57, %v420_v57  ;;  %v834_v61 = vadd.f32 %v833_v54, %v771_v53  ;;  %v1488_v62 = vpop.f32.mrb[11].mxu1 }
  0xfb   :  { %v835_v0 = vadd.f32 %v834_v61, %v772_v60  ;;  %v1077_v1 = vpop.f32.mrb[12].mxu0  ;;  %v700_v2 = vadd.f32 %v1074_v55, %v699_v59 }
  0xfc   :  { %v430_v3 = vpop.f32.mrb[13].mxu0  ;;  %v1490_v4 = vpop.f32.mrb[12].mxu1  ;;  %v775_v9 = vmul.f32 %v1077_v1, %v1077_v1 }
  0xfd   :  { %v701_v5 = vadd.f32 %v700_v2, %v430_v3  ;;  %v774_v6 = vmul.f32 %v430_v3, %v430_v3  ;;  %v836_v7 = vadd.f32 %v835_v0, %v773_v63  ;;  %v1492_v8 = vpop.f32.mrb[13].mxu1 }
  0xff   :  { %v837_v10 = vadd.f32 %v836_v7, %v774_v6  ;;  %v1080_v11 = vpop.f32.mrb[14].mxu0  ;;  %v702_v13 = vadd.f32 %v1077_v1, %v701_v5 }
 0x100   :  { %v440_v14 = vpop.f32.mrb[15].mxu0  ;;  %v1494_v16 = vpop.f32.mrb[14].mxu1  ;;  %v777_v23 = vmul.f32 %v1080_v11, %v1080_v11 }
 0x101   :  { %v703_v17 = vadd.f32 %v702_v13, %v440_v14  ;;  %v776_v18 = vmul.f32 %v440_v14, %v440_v14  ;;  %v838_v20 = vadd.f32 %v837_v10, %v775_v9  ;;  %v1496_v21 = vpop.f32.mrb[15].mxu1 }
 0x103   :  { %v839_v24 = vadd.f32 %v838_v20, %v776_v18  ;;  %v1083_v25 = vpop.f32.mrb[16].mxu0  ;;  %v704_v26 = vadd.f32 %v1080_v11, %v703_v17 }
 0x104   :  { %v450_v27 = vpop.f32.mrb[17].mxu0  ;;  %v1498_v29 = vpop.f32.mrb[16].mxu1  ;;  %v779_v35 = vmul.f32 %v1083_v25, %v1083_v25 }
 0x105   :  { %v705_v30 = vadd.f32 %v704_v26, %v450_v27  ;;  %v778_v31 = vmul.f32 %v450_v27, %v450_v27  ;;  %v840_v33 = vadd.f32 %v839_v24, %v777_v23  ;;  %v1500_v34 = vpop.f32.mrb[17].mxu1 }
 0x107   :  { %v841_v36 = vadd.f32 %v840_v33, %v778_v31  ;;  %v1086_v37 = vpop.f32.mrb[18].mxu0  ;;  %v706_v39 = vadd.f32 %v1083_v25, %v705_v30 }
 0x108   :  { %v460_v40 = vpop.f32.mrb[19].mxu0  ;;  %v1502_v41 = vpop.f32.mrb[18].mxu1  ;;  %v781_v47 = vmul.f32 %v1086_v37, %v1086_v37 }
 0x109   :  { %v707_v43 = vadd.f32 %v706_v39, %v460_v40  ;;  %v780_v44 = vmul.f32 %v460_v40, %v460_v40  ;;  %v842_v45 = vadd.f32 %v841_v36, %v779_v35  ;;  %v1504_v46 = vpop.f32.mrb[19].mxu1 }
 0x10b   :  { %v843_v49 = vadd.f32 %v842_v45, %v780_v44  ;;  %v1089_v50 = vpop.f32.mrb[20].mxu0  ;;  %v708_v51 = vadd.f32 %v1086_v37, %v707_v43 }
 0x10c   :  { %v470_v53 = vpop.f32.mrb[21].mxu0  ;;  %v1506_v54 = vpop.f32.mrb[20].mxu1  ;;  %v783_v60 = vmul.f32 %v1089_v50, %v1089_v50 }
 0x10d   :  { %v709_v55 = vadd.f32 %v708_v51, %v470_v53  ;;  %v782_v56 = vmul.f32 %v470_v53, %v470_v53  ;;  %v844_v57 = vadd.f32 %v843_v49, %v781_v47  ;;  %v1508_v59 = vpop.f32.mrb[21].mxu1 }
 0x10f   :  { %v845_v61 = vadd.f32 %v844_v57, %v782_v56  ;;  %v1092_v63 = vpop.f32.mrb[22].mxu0  ;;  %v710_v0 = vadd.f32 %v1089_v50, %v709_v55 }
 0x110   :  { %v480_v1 = vpop.f32.mrb[23].mxu0  ;;  %v1510_v2 = vpop.f32.mrb[22].mxu1  ;;  %v785_v9 = vmul.f32 %v1092_v63, %v1092_v63 }
 0x111   :  { %v711_v3 = vadd.f32 %v710_v0, %v480_v1  ;;  %v784_v5 = vmul.f32 %v480_v1, %v480_v1  ;;  %v846_v6 = vadd.f32 %v845_v61, %v783_v60  ;;  %v1512_v7 = vpop.f32.mrb[23].mxu1 }
 0x113   :  { %v847_v10 = vadd.f32 %v846_v6, %v784_v5  ;;  %v1095_v11 = vpop.f32.mrb[24].mxu0  ;;  %v712_v13 = vadd.f32 %v1092_v63, %v711_v3 }
 0x114   :  { %v490_v14 = vpop.f32.mrb[25].mxu0  ;;  %v1514_v17 = vpop.f32.mrb[24].mxu1  ;;  %v787_v25 = vmul.f32 %v1095_v11, %v1095_v11 }
 0x115   :  { %v713_v18 = vadd.f32 %v712_v13, %v490_v14  ;;  %v786_v20 = vmul.f32 %v490_v14, %v490_v14  ;;  %v848_v23 = vadd.f32 %v847_v10, %v785_v9  ;;  %v1516_v24 = vpop.f32.mrb[25].mxu1  ;;  %v794_v13 = vmul.f32 %v1468_v15, %v1468_v15 }
 0x117   :  { %v849_v26 = vadd.f32 %v848_v23, %v786_v20  ;;  %v1098_v27 = vpop.f32.mrb[26].mxu0  ;;  %v714_v30 = vadd.f32 %v1095_v11, %v713_v18  ;;  %v795_v20 = vmul.f32 %v1466_v12, %v1466_v12 }
 0x118   :  { %v500_v31 = vpop.f32.mrb[27].mxu0  ;;  %v1518_v33 = vpop.f32.mrb[26].mxu1  ;;  %v789_v40 = vmul.f32 %v1098_v27, %v1098_v27 }
 0x119   :  { %v715_v35 = vadd.f32 %v714_v30, %v500_v31  ;;  %v788_v36 = vmul.f32 %v500_v31, %v500_v31  ;;  %v850_v37 = vadd.f32 %v849_v26, %v787_v25  ;;  %v1520_v39 = vpop.f32.mrb[27].mxu1  ;;  %v796_v26 = vmul.f32 %v1472_v22, %v1472_v22 }
 0x11a   :  { %v797_v31 = vmul.f32 %v1470_v19, %v1470_v19 }
 0x11b   :  { %v851_v43 = vadd.f32 %v850_v37, %v788_v36  ;;  %v1101_v44 = vpop.f32.mrb[28].mxu0  ;;  %v716_v45 = vadd.f32 %v1098_v27, %v715_v35 }
 0x11c   :  { %v510_v47 = vpop.f32.mrb[29].mxu0  ;;  %v1522_v49 = vpop.f32.mrb[28].mxu1  ;;  %v791_v56 = vmul.f32 %v1101_v44, %v1101_v44 }
 0x11d   :  { %v717_v50 = vadd.f32 %v716_v45, %v510_v47  ;;  %v790_v51 = vmul.f32 %v510_v47, %v510_v47  ;;  %v852_v53 = vadd.f32 %v851_v43, %v789_v40  ;;  %v1524_v55 = vpop.f32.mrb[29].mxu1 }
 0x11f   :  { %v853_v57 = vadd.f32 %v852_v53, %v790_v51  ;;  %v1104_v60 = vpop.f32.mrb[30].mxu0  ;;  %v718_v61 = vadd.f32 %v1101_v44, %v717_v50 }
 0x120   :  { %v520_v63 = vpop.f32.mrb[31].mxu0  ;;  %v1526_v0 = vpop.f32.mrb[30].mxu1  ;;  %v793_v9 = vmul.f32 %v1104_v60, %v1104_v60 }
 0x121   :  { %v719_v1 = vadd.f32 %v718_v61, %v520_v63  ;;  %v792_v3 = vmul.f32 %v520_v63, %v520_v63  ;;  %v854_v5 = vadd.f32 %v853_v57, %v791_v56  ;;  %v1528_v6 = vpop.f32.mrb[31].mxu1 }
 0x123   :  { %v720_v10 = vadd.f32 %v1104_v60, %v719_v1  ;;  %v855_v11 = vadd.f32 %v854_v5, %v792_v3 }
 0x125   :  { %v856_v14 = vadd.f32 %v855_v11, %v793_v9  ;;  %v721_v18 = vadd.f32 %v720_v10, %v1468_v15  ;;  %v798_v15 = vmul.f32 %v1476_v32, %v1476_v32 }
 0x127   :  { %v857_v23 = vadd.f32 %v856_v14, %v794_v13  ;;  %v722_v25 = vadd.f32 %v1466_v12, %v721_v18  ;;  %v799_v12 = vmul.f32 %v1474_v28, %v1474_v28 }
 0x129   :  { %v723_v27 = vadd.f32 %v722_v25, %v1472_v22  ;;  %v858_v30 = vadd.f32 %v857_v23, %v795_v20  ;;  %v800_v22 = vmul.f32 %v1480_v42, %v1480_v42 }
 0x12b   :  { %v859_v35 = vadd.f32 %v858_v30, %v796_v26  ;;  %v724_v36 = vadd.f32 %v1470_v19, %v723_v27  ;;  %v801_v19 = vmul.f32 %v1478_v38, %v1478_v38 }
 0x12d   :  { %v725_v37 = vadd.f32 %v724_v36, %v1476_v32  ;;  %v860_v40 = vadd.f32 %v859_v35, %v797_v31  ;;  %v802_v32 = vmul.f32 %v1484_v52, %v1484_v52 }
 0x12f   :  { %v861_v43 = vadd.f32 %v860_v40, %v798_v15  ;;  %v726_v44 = vadd.f32 %v1474_v28, %v725_v37  ;;  %v803_v28 = vmul.f32 %v1482_v48, %v1482_v48 }
 0x131   :  { %v727_v45 = vadd.f32 %v726_v44, %v1480_v42  ;;  %v862_v47 = vadd.f32 %v861_v43, %v799_v12  ;;  %v804_v42 = vmul.f32 %v1488_v62, %v1488_v62 }
 0x133   :  { %v863_v50 = vadd.f32 %v862_v47, %v800_v22  ;;  %v728_v51 = vadd.f32 %v1478_v38, %v727_v45  ;;  %v805_v38 = vmul.f32 %v1486_v58, %v1486_v58 }
 0x135   :  { %v729_v53 = vadd.f32 %v728_v51, %v1484_v52  ;;  %v864_v56 = vadd.f32 %v863_v50, %v801_v19  ;;  %v806_v52 = vmul.f32 %v1492_v8, %v1492_v8 }
 0x137   :  { %v865_v57 = vadd.f32 %v864_v56, %v802_v32  ;;  %v730_v60 = vadd.f32 %v1482_v48, %v729_v53  ;;  %v807_v48 = vmul.f32 %v1490_v4, %v1490_v4 }
 0x139   :  { %v731_v61 = vadd.f32 %v730_v60, %v1488_v62  ;;  %v866_v63 = vadd.f32 %v865_v57, %v803_v28  ;;  %v808_v62 = vmul.f32 %v1496_v21, %v1496_v21 }
 0x13b   :  { %v867_v1 = vadd.f32 %v866_v63, %v804_v42  ;;  %v732_v3 = vadd.f32 %v1486_v58, %v731_v61  ;;  %v809_v58 = vmul.f32 %v1494_v16, %v1494_v16 }
 0x13d   :  { %v733_v5 = vadd.f32 %v732_v3, %v1492_v8  ;;  %v868_v9 = vadd.f32 %v867_v1, %v805_v38  ;;  %v810_v8 = vmul.f32 %v1500_v34, %v1500_v34 }
 0x13f   :  { %v869_v10 = vadd.f32 %v868_v9, %v806_v52  ;;  %v734_v11 = vadd.f32 %v1490_v4, %v733_v5  ;;  %v811_v4 = vmul.f32 %v1498_v29, %v1498_v29 }
 0x141   :  { %v735_v13 = vadd.f32 %v734_v11, %v1496_v21  ;;  %v870_v14 = vadd.f32 %v869_v10, %v807_v48  ;;  %v812_v21 = vmul.f32 %v1504_v46, %v1504_v46 }
 0x143   :  { %v871_v18 = vadd.f32 %v870_v14, %v808_v62  ;;  %v736_v20 = vadd.f32 %v1494_v16, %v735_v13  ;;  %v813_v16 = vmul.f32 %v1502_v41, %v1502_v41 }
 0x145   :  { %v737_v23 = vadd.f32 %v736_v20, %v1500_v34  ;;  %v872_v25 = vadd.f32 %v871_v18, %v809_v58  ;;  %v814_v34 = vmul.f32 %v1508_v59, %v1508_v59 }
 0x147   :  { %v873_v26 = vadd.f32 %v872_v25, %v810_v8  ;;  %v738_v27 = vadd.f32 %v1498_v29, %v737_v23  ;;  %v815_v29 = vmul.f32 %v1506_v54, %v1506_v54 }
 0x149   :  { %v739_v30 = vadd.f32 %v738_v27, %v1504_v46  ;;  %v874_v31 = vadd.f32 %v873_v26, %v811_v4  ;;  %v816_v46 = vmul.f32 %v1512_v7, %v1512_v7 }
 0x14b   :  { %v875_v35 = vadd.f32 %v874_v31, %v812_v21  ;;  %v740_v36 = vadd.f32 %v1502_v41, %v739_v30  ;;  %v817_v41 = vmul.f32 %v1510_v2, %v1510_v2 }
 0x14d   :  { %v741_v15 = vadd.f32 %v740_v36, %v1508_v59  ;;  %v876_v37 = vadd.f32 %v875_v35, %v813_v16  ;;  %v818_v59 = vmul.f32 %v1516_v24, %v1516_v24 }
 0x14f   :  { %v877_v40 = vadd.f32 %v876_v37, %v814_v34  ;;  %v742_v12 = vadd.f32 %v1506_v54, %v741_v15  ;;  %v819_v54 = vmul.f32 %v1514_v17, %v1514_v17 }
 0x151   :  { %v743_v43 = vadd.f32 %v742_v12, %v1512_v7  ;;  %v878_v44 = vadd.f32 %v877_v40, %v815_v29  ;;  %v820_v7 = vmul.f32 %v1520_v39, %v1520_v39 }
 0x153   :  { %v879_v22 = vadd.f32 %v878_v44, %v816_v46  ;;  %v744_v45 = vadd.f32 %v1510_v2, %v743_v43  ;;  %v821_v2 = vmul.f32 %v1518_v33, %v1518_v33 }
 0x155   :  { %v745_v47 = vadd.f32 %v744_v45, %v1516_v24  ;;  %v880_v19 = vadd.f32 %v879_v22, %v817_v41  ;;  %v822_v24 = vmul.f32 %v1524_v55, %v1524_v55 }
 0x157   :  { %v881_v50 = vadd.f32 %v880_v19, %v818_v59  ;;  %v746_v51 = vadd.f32 %v1514_v17, %v745_v47  ;;  %v823_v17 = vmul.f32 %v1522_v49, %v1522_v49 }
 0x159   :  { %v747_v32 = vadd.f32 %v746_v51, %v1520_v39  ;;  %v882_v53 = vadd.f32 %v881_v50, %v819_v54  ;;  %v824_v39 = vmul.f32 %v1528_v6, %v1528_v6 }
 0x15b   :  { %v883_v56 = vadd.f32 %v882_v53, %v820_v7  ;;  %v748_v28 = vadd.f32 %v1518_v33, %v747_v32  ;;  %v825_v33 = vmul.f32 %v1526_v0, %v1526_v0 }
 0x15d   :  { %v749_v57 = vadd.f32 %v748_v28, %v1524_v55  ;;  %v884_v60 = vadd.f32 %v883_v56, %v821_v2 }
 0x15f   :  { %v885_v42 = vadd.f32 %v884_v60, %v822_v24  ;;  %v750_v61 = vadd.f32 %v1522_v49, %v749_v57 }
 0x161   :  { %v751_v63 = vadd.f32 %v750_v61, %v1528_v6  ;;  %v886_v38 = vadd.f32 %v885_v42, %v823_v17 }
 0x163   :  { %v752_v1 = vadd.f32 %v1526_v0, %v751_v63  ;;  %v887_v3 = vadd.f32 %v886_v38, %v824_v39 }
 0x165   :  { %v753_v55 = vrot.slane %v752_v1, 4  ;;  %v888_v52 = vadd.f32 %v887_v3, %v825_v33 }
 0x167   :  { %v754_v5 = vadd.f32 %v753_v55, %v752_v1  ;;  %v889_v9 = vrot.slane %v888_v52, 4 }
 0x169   :  { %v755_v48 = vrot.slane %v754_v5, 2  ;;  %v890_v10 = vadd.f32 %v889_v9, %v888_v52 }
 0x16b   :  { %v756_v11 = vadd.f32 %v755_v48, %v754_v5  ;;  %v891_v49 = vrot.slane %v890_v10, 2 }
 0x16d   :  { %v757_v62 = vrot.slane %v756_v11, 1  ;;  %v892_v13 = vadd.f32 %v891_v49, %v890_v10 }
 0x16f   :  { %v758_v14 = vadd.f32 %v757_v62, %v756_v11  ;;  %v893_v58 = vrot.slane %v892_v13, 1 }
 0x171   :  { %v894_v6 = vadd.f32 %v893_v58, %v892_v13  ;;  %760 = vst [vmem:[%s1634_s2] sm:$0xff] %v758_v14 }
 0x173   :  { %896 = vst [vmem:[%s1635_s3] sm:$0xff] %v894_v6 }

// kernel: bn_conv2d.3
= control target key start
LH: loop header
LB: loop body
LE: loop exit
PB: predicated region body
PF: predicated region fallthrough
CT: control target
= control target key end

     0   :  { %vm87_vm0 = vcmask 392192   ;;  %s1830_s1 = inlined_call_operand.vmem [shape: f32[48,128], index: 1, kind: input, shape index: {}]   ;;  %s1831_s0 = inlined_call_operand.vmem [shape: f32[512,48], index: 0, kind: input, shape index: {}]   ;;  %s1832_s2 = inlined_call_operand.vmem [shape: f32[1,128], index: 2, kind: input, shape index: {}]   ;;  %s1833_s3 = inlined_call_operand.vmem [shape: f32[1,128], index: 3, kind: input, shape index: {}]   ;;  %s1834_s4 = inlined_call_operand.vmem [shape: f32[512,128], index: 4, kind: output, shape index: {}]  }
   0x1   :  { %v81_v0 = vld [vmem:[%s1830_s1] sm:$0xff]  ;;  %v82_v1 = vld [vmem:[%s1830_s1 + $0x8] sm:$0xff]  ;;  %v83_v2 = vld [vmem:[%s1830_s1 + $0x10] sm:$0xff] }
   0x2   :  { %v1183_v3 = vpack.c.bf16 %v82_v1, %v81_v0  ;;  %v84_v4 = vld [vmem:[%s1830_s1 + $0x18] sm:$0xff]  ;;  %v85_v6 = vld [vmem:[%s1830_s1 + $0x20] sm:$0xff]  ;;  %v86_v7 = vld [vmem:[%s1830_s1 + $0x28] sm:$0xff] }
   0x3   :  { %v1187_v5 = vpack.c.bf16 %v84_v4, %v83_v2  ;;  %v17_v8 = vld [vmem:[%s1831_s0] sm:$0xff]  ;;  %v1191_v10 = vpack.c.bf16 %v86_v7, %v85_v6  ;;  %v18_v11 = vld [vmem:[%s1831_s0 + $0x8] sm:$0xff]  ;;  %v19_v13 = vld [vmem:[%s1831_s0 + $0x10] sm:$0xff] }
   0x4   :  { %1184 = vmatprep.subr.bf16.mxu0 %v1183_v3  ;;  %1195 = vmatprep.subr.bf16.mxu1 %v1183_v3  ;;  %v49_v9 = vld [vmem:[%s1831_s0 + $0x100] sm:$0xff]  ;;  %v50_v12 = vld [vmem:[%s1831_s0 + $0x108] sm:$0xff]  ;;  %v51_v14 = vld [vmem:[%s1831_s0 + $0x110] sm:$0xff] }
   0x5   :  { %1186 = vmatpush3.bf16.msra.mxu0 %v1183_v3  ;;  %1198 = vmatpush3.bf16.msra.mxu1 %v1183_v3  ;;  %v20_v15 = vld [vmem:[%s1831_s0 + $0x18] sm:$0xff]  ;;  %v21_v17 = vld [vmem:[%s1831_s0 + $0x20] sm:$0xff]  ;;  %v22_v19 = vld [vmem:[%s1831_s0 + $0x28] sm:$0xff] }
   0x6   :  { %1188 = vmatprep.subr.bf16.mxu0 %v1187_v5  ;;  %1196 = vmatprep.subr.bf16.mxu1 %v1187_v5  ;;  %v52_v16 = vld [vmem:[%s1831_s0 + $0x118] sm:$0xff]  ;;  %v53_v18 = vld [vmem:[%s1831_s0 + $0x120] sm:$0xff]  ;;  %v54_v20 = vld [vmem:[%s1831_s0 + $0x128] sm:$0xff] }
   0x7   :  { %1087 = vmatprep.mubr.msk.f32.mxu0 %vm87_vm0, %v17_v8  ;;  %1135 = vmatprep.mubr.msk.f32.mxu1 %vm87_vm0, %v49_v9  ;;  %v23_v21 = vld [vmem:[%s1831_s0 + $0x30] sm:$0xff]  ;;  %v24_v23 = vld [vmem:[%s1831_s0 + $0x38] sm:$0xff]  ;;  %v25_v25 = vld [vmem:[%s1831_s0 + $0x40] sm:$0xff] }
   0x8   :  { %v55_v22 = vld [vmem:[%s1831_s0 + $0x130] sm:$0xff]  ;;  %v56_v24 = vld [vmem:[%s1831_s0 + $0x138] sm:$0xff]  ;;  %v57_v26 = vld [vmem:[%s1831_s0 + $0x140] sm:$0xff] }
   0x9   :  { %1190 = vmatpush3.bf16.msra.mxu0 %v1187_v5  ;;  %1199 = vmatpush3.bf16.msra.mxu1 %v1187_v5  ;;  %v26_v27 = vld [vmem:[%s1831_s0 + $0x48] sm:$0xff]  ;;  %v27_v29 = vld [vmem:[%s1831_s0 + $0x50] sm:$0xff]  ;;  %v28_v31 = vld [vmem:[%s1831_s0 + $0x58] sm:$0xff] }
   0xa   :  { %1192 = vmatprep.subr.bf16.mxu0 %v1191_v10  ;;  %1197 = vmatprep.subr.bf16.mxu1 %v1191_v10  ;;  %v58_v28 = vld [vmem:[%s1831_s0 + $0x148] sm:$0xff]  ;;  %v59_v30 = vld [vmem:[%s1831_s0 + $0x150] sm:$0xff]  ;;  %v60_v32 = vld [vmem:[%s1831_s0 + $0x158] sm:$0xff] }
   0xb   :  { %v29_v33 = vld [vmem:[%s1831_s0 + $0x60] sm:$0xff]  ;;  %v30_v35 = vld [vmem:[%s1831_s0 + $0x68] sm:$0xff]  ;;  %v31_v37 = vld [vmem:[%s1831_s0 + $0x70] sm:$0xff] }
   0xc   :  { %v61_v34 = vld [vmem:[%s1831_s0 + $0x160] sm:$0xff]  ;;  %v62_v36 = vld [vmem:[%s1831_s0 + $0x168] sm:$0xff]  ;;  %v63_v38 = vld [vmem:[%s1831_s0 + $0x170] sm:$0xff] }
   0xd   :  { %1194 = vmatpush3.bf16.msra.mxu0 %v1191_v10  ;;  %1200 = vmatpush3.bf16.msra.mxu1 %v1191_v10  ;;  %v32_v39 = vld [vmem:[%s1831_s0 + $0x78] sm:$0xff]  ;;  %v33_v41 = vld [vmem:[%s1831_s0 + $0x80] sm:$0xff]  ;;  %v34_v43 = vld [vmem:[%s1831_s0 + $0x88] sm:$0xff] }
   0xe   :  { %v64_v40 = vld [vmem:[%s1831_s0 + $0x178] sm:$0xff]  ;;  %v65_v42 = vld [vmem:[%s1831_s0 + $0x180] sm:$0xff]  ;;  %v66_v44 = vld [vmem:[%s1831_s0 + $0x188] sm:$0xff] }
   0xf   :  { %v35_v45 = vld [vmem:[%s1831_s0 + $0x90] sm:$0xff]  ;;  %v36_v47 = vld [vmem:[%s1831_s0 + $0x98] sm:$0xff]  ;;  %v37_v49 = vld [vmem:[%s1831_s0 + $0xa0] sm:$0xff] }
  0x10   :  { %1088 = vmatmul.mubr.msk.f32.vlgmr.msra.gmra.mrb[0].mxu0 %vm87_vm0, %v18_v11  ;;  %1136 = vmatmul.mubr.msk.f32.vlgmr.msra.gmra.mrb[0].mxu1 %vm87_vm0, %v50_v12  ;;  %v67_v46 = vld [vmem:[%s1831_s0 + $0x190] sm:$0xff]  ;;  %v68_v48 = vld [vmem:[%s1831_s0 + $0x198] sm:$0xff]  ;;  %v69_v50 = vld [vmem:[%s1831_s0 + $0x1a0] sm:$0xff] }
  0x11   :  { %1090 = vmatprep.mubr.msk.f32.mxu0 %vm87_vm0, %v19_v13  ;;  %1138 = vmatprep.mubr.msk.f32.mxu1 %vm87_vm0, %v51_v14  ;;  %v38_v51 = vld [vmem:[%s1831_s0 + $0xa8] sm:$0xff]  ;;  %v39_v53 = vld [vmem:[%s1831_s0 + $0xb0] sm:$0xff]  ;;  %v40_v55 = vld [vmem:[%s1831_s0 + $0xb8] sm:$0xff] }
  0x12   :  { %v70_v52 = vld [vmem:[%s1831_s0 + $0x1a8] sm:$0xff]  ;;  %v71_v54 = vld [vmem:[%s1831_s0 + $0x1b0] sm:$0xff]  ;;  %v72_v56 = vld [vmem:[%s1831_s0 + $0x1b8] sm:$0xff] }
  0x13   :  { %v41_v57 = vld [vmem:[%s1831_s0 + $0xc0] sm:$0xff]  ;;  %v42_v59 = vld [vmem:[%s1831_s0 + $0xc8] sm:$0xff]  ;;  %v43_v61 = vld [vmem:[%s1831_s0 + $0xd0] sm:$0xff] }
  0x14   :  { %1091 = vmatmul.mubr.msk.f32.gmra.mrb[2].mxu0 %vm87_vm0, %v20_v15  ;;  %1139 = vmatmul.mubr.msk.f32.gmra.mrb[2].mxu1 %vm87_vm0, %v52_v16  ;;  %v73_v58 = vld [vmem:[%s1831_s0 + $0x1c0] sm:$0xff]  ;;  %v74_v60 = vld [vmem:[%s1831_s0 + $0x1c8] sm:$0xff]  ;;  %v75_v62 = vld [vmem:[%s1831_s0 + $0x1d0] sm:$0xff] }
  0x15   :  { %1093 = vmatprep.mubr.msk.f32.mxu0 %vm87_vm0, %v21_v17  ;;  %1141 = vmatprep.mubr.msk.f32.mxu1 %vm87_vm0, %v53_v18  ;;  %v44_v63 = vld [vmem:[%s1831_s0 + $0xd8] sm:$0xff]  ;;  %v45_v1 = vld [vmem:[%s1831_s0 + $0xe0] sm:$0xff]  ;;  %v46_v3 = vld [vmem:[%s1831_s0 + $0xe8] sm:$0xff] }
  0x16   :  { %v76_v0 = vld [vmem:[%s1831_s0 + $0x1d8] sm:$0xff]  ;;  %v77_v2 = vld [vmem:[%s1831_s0 + $0x1e0] sm:$0xff]  ;;  %v78_v4 = vld [vmem:[%s1831_s0 + $0x1e8] sm:$0xff] }
  0x17   :  { %v47_v5 = vld [vmem:[%s1831_s0 + $0xf0] sm:$0xff]  ;;  %v48_v7 = vld [vmem:[%s1831_s0 + $0xf8] sm:$0xff]  ;;  %v1503_v9 = vld [vmem:[%s1832_s2] ss:$0 sm:$0xff] }
  0x18   :  { %1094 = vmatmul.mubr.msk.f32.gmra.mrb[4].mxu0 %vm87_vm0, %v22_v19  ;;  %1142 = vmatmul.mubr.msk.f32.gmra.mrb[4].mxu1 %vm87_vm0, %v54_v20  ;;  %v79_v6 = vld [vmem:[%s1831_s0 + $0x1f0] sm:$0xff]  ;;  %v80_v8 = vld [vmem:[%s1831_s0 + $0x1f8] sm:$0xff]  ;;  %v1508_v11 = vld [vmem:[%s1833_s3] ss:$0 sm:$0xff] }
  0x19   :  { %1096 = vmatprep.mubr.msk.f32.mxu0 %vm87_vm0, %v23_v21  ;;  %1144 = vmatprep.mubr.msk.f32.mxu1 %vm87_vm0, %v55_v22 }
  0x1c   :  { %1097 = vmatmul.mubr.msk.f32.gmra.mrb[6].mxu0 %vm87_vm0, %v24_v23  ;;  %1145 = vmatmul.mubr.msk.f32.gmra.mrb[6].mxu1 %vm87_vm0, %v56_v24 }
  0x1d   :  { %1099 = vmatprep.mubr.msk.f32.mxu0 %vm87_vm0, %v25_v25  ;;  %1147 = vmatprep.mubr.msk.f32.mxu1 %vm87_vm0, %v57_v26 }
  0x20   :  { %1100 = vmatmul.mubr.msk.f32.gmra.mrb[8].mxu0 %vm87_vm0, %v26_v27  ;;  %1148 = vmatmul.mubr.msk.f32.gmra.mrb[8].mxu1 %vm87_vm0, %v58_v28 }
  0x21   :  { %1102 = vmatprep.mubr.msk.f32.mxu0 %vm87_vm0, %v27_v29  ;;  %1150 = vmatprep.mubr.msk.f32.mxu1 %vm87_vm0, %v59_v30 }
  0x24   :  { %1103 = vmatmul.mubr.msk.f32.gmra.mrb[10].mxu0 %vm87_vm0, %v28_v31  ;;  %1151 = vmatmul.mubr.msk.f32.gmra.mrb[10].mxu1 %vm87_vm0, %v60_v32 }
  0x25   :  { %1105 = vmatprep.mubr.msk.f32.mxu0 %vm87_vm0, %v29_v33  ;;  %1153 = vmatprep.mubr.msk.f32.mxu1 %vm87_vm0, %v61_v34 }
  0x28   :  { %1106 = vmatmul.mubr.msk.f32.gmra.mrb[12].mxu0 %vm87_vm0, %v30_v35  ;;  %1154 = vmatmul.mubr.msk.f32.gmra.mrb[12].mxu1 %vm87_vm0, %v62_v36 }
  0x29   :  { %1108 = vmatprep.mubr.msk.f32.mxu0 %vm87_vm0, %v31_v37  ;;  %1156 = vmatprep.mubr.msk.f32.mxu1 %vm87_vm0, %v63_v38 }
  0x2c   :  { %1109 = vmatmul.mubr.msk.f32.gmra.mrb[14].mxu0 %vm87_vm0, %v32_v39  ;;  %1157 = vmatmul.mubr.msk.f32.gmra.mrb[14].mxu1 %vm87_vm0, %v64_v40 }
  0x2d   :  { %1111 = vmatprep.mubr.msk.f32.mxu0 %vm87_vm0, %v33_v41  ;;  %1159 = vmatprep.mubr.msk.f32.mxu1 %vm87_vm0, %v65_v42 }
  0x30   :  { %1112 = vmatmul.mubr.msk.f32.gmra.mrb[16].mxu0 %vm87_vm0, %v34_v43  ;;  %1160 = vmatmul.mubr.msk.f32.gmra.mrb[16].mxu1 %vm87_vm0, %v66_v44 }
  0x31   :  { %1114 = vmatprep.mubr.msk.f32.mxu0 %vm87_vm0, %v35_v45  ;;  %1162 = vmatprep.mubr.msk.f32.mxu1 %vm87_vm0, %v67_v46 }
  0x34   :  { %1115 = vmatmul.mubr.msk.f32.gmra.mrb[18].mxu0 %vm87_vm0, %v36_v47  ;;  %1163 = vmatmul.mubr.msk.f32.gmra.mrb[18].mxu1 %vm87_vm0, %v68_v48 }
  0x35   :  { %1117 = vmatprep.mubr.msk.f32.mxu0 %vm87_vm0, %v37_v49  ;;  %1165 = vmatprep.mubr.msk.f32.mxu1 %vm87_vm0, %v69_v50 }
  0x38   :  { %1118 = vmatmul.mubr.msk.f32.gmra.mrb[20].mxu0 %vm87_vm0, %v38_v51  ;;  %1166 = vmatmul.mubr.msk.f32.gmra.mrb[20].mxu1 %vm87_vm0, %v70_v52 }
  0x39   :  { %1120 = vmatprep.mubr.msk.f32.mxu0 %vm87_vm0, %v39_v53  ;;  %1168 = vmatprep.mubr.msk.f32.mxu1 %vm87_vm0, %v71_v54 }
  0x3c   :  { %1121 = vmatmul.mubr.msk.f32.gmra.mrb[22].mxu0 %vm87_vm0, %v40_v55  ;;  %1169 = vmatmul.mubr.msk.f32.gmra.mrb[22].mxu1 %vm87_vm0, %v72_v56 }
  0x3d   :  { %1123 = vmatprep.mubr.msk.f32.mxu0 %vm87_vm0, %v41_v57  ;;  %1171 = vmatprep.mubr.msk.f32.mxu1 %vm87_vm0, %v73_v58 }
  0x40   :  { %1124 = vmatmul.mubr.msk.f32.gmra.mrb[24].mxu0 %vm87_vm0, %v42_v59  ;;  %1172 = vmatmul.mubr.msk.f32.gmra.mrb[24].mxu1 %vm87_vm0, %v74_v60 }
  0x41   :  { %1126 = vmatprep.mubr.msk.f32.mxu0 %vm87_vm0, %v43_v61  ;;  %1174 = vmatprep.mubr.msk.f32.mxu1 %vm87_vm0, %v75_v62 }
  0x44   :  { %1127 = vmatmul.mubr.msk.f32.gmra.mrb[26].mxu0 %vm87_vm0, %v44_v63  ;;  %1175 = vmatmul.mubr.msk.f32.gmra.mrb[26].mxu1 %vm87_vm0, %v76_v0 }
  0x45   :  { %1129 = vmatprep.mubr.msk.f32.mxu0 %vm87_vm0, %v45_v1  ;;  %1177 = vmatprep.mubr.msk.f32.mxu1 %vm87_vm0, %v77_v2 }
  0x48   :  { %1130 = vmatmul.mubr.msk.f32.gmra.mrb[28].mxu0 %vm87_vm0, %v46_v3  ;;  %1178 = vmatmul.mubr.msk.f32.gmra.mrb[28].mxu1 %vm87_vm0, %v78_v4 }
  0x49   :  { %1132 = vmatprep.mubr.msk.f32.mxu0 %vm87_vm0, %v47_v5  ;;  %1180 = vmatprep.mubr.msk.f32.mxu1 %vm87_vm0, %v79_v6 }
  0x4c   :  { %1133 = vmatmul.mubr.msk.f32.gmra.mrb[30].mxu0 %vm87_vm0, %v48_v7  ;;  %1181 = vmatmul.mubr.msk.f32.gmra.mrb[30].mxu1 %vm87_vm0, %v80_v8 }
  0xe3   :  { %v1089_v10 = vpop.f32.mrb[0].mxu0  ;;  %v1137_v12 = vpop.f32.mrb[0].mxu1 }
  0xe4   :  { %v673_v13 = vmul.f32 %v1089_v10, %v1503_v9  ;;  %v705_v14 = vmul.f32 %v1137_v12, %v1503_v9  ;;  %v346_v15 = vpop.f32.mrb[1].mxu0  ;;  %v506_v16 = vpop.f32.mrb[1].mxu1 }
  0xe5   :  { %v672_v17 = vmul.f32 %v1503_v9, %v346_v15  ;;  %v704_v18 = vmul.f32 %v1503_v9, %v506_v16 }
  0xe6   :  { %v744_v19 = vadd.f32 %v1508_v11, %v673_v13  ;;  %v776_v20 = vadd.f32 %v1508_v11, %v705_v14 }
  0xe7   :  { %v743_v21 = vadd.f32 %v1508_v11, %v672_v17  ;;  %v775_v22 = vadd.f32 %v1508_v11, %v704_v18  ;;  %v1092_v23 = vpop.f32.mrb[2].mxu0  ;;  %v1140_v24 = vpop.f32.mrb[2].mxu1 }
  0xe8   :  { %v808_v25 = vmax.f32 %v744_v19, 0.0  ;;  %v840_v26 = vmax.f32 %v776_v20, 0.0  ;;  %v675_v27 = vmul.f32 %v1092_v23, %v1503_v9  ;;  %v707_v28 = vmul.f32 %v1140_v24, %v1503_v9  ;;  %v356_v29 = vpop.f32.mrb[3].mxu0  ;;  %v516_v30 = vpop.f32.mrb[3].mxu1 }
  0xe9   :  { %v807_v31 = vmax.f32 %v743_v21, 0.0  ;;  %v839_v32 = vmax.f32 %v775_v22, 0.0  ;;  %v674_v33 = vmul.f32 %v1503_v9, %v356_v29  ;;  %v706_v34 = vmul.f32 %v1503_v9, %v516_v30 }
  0xea   :  { %872 = vst [vmem:[%s1834_s4 + $0x8] sm:$0xff] %v808_v25  ;;  %904 = vst [vmem:[%s1834_s4 + $0x108] sm:$0xff] %v840_v26  ;;  %v746_v35 = vadd.f32 %v1508_v11, %v675_v27  ;;  %v778_v36 = vadd.f32 %v1508_v11, %v707_v28 }
  0xeb   :  { %871 = vst [vmem:[%s1834_s4] sm:$0xff] %v807_v31  ;;  %903 = vst [vmem:[%s1834_s4 + $0x100] sm:$0xff] %v839_v32  ;;  %v745_v37 = vadd.f32 %v1508_v11, %v674_v33  ;;  %v777_v38 = vadd.f32 %v1508_v11, %v706_v34  ;;  %v1095_v39 = vpop.f32.mrb[4].mxu0  ;;  %v1143_v40 = vpop.f32.mrb[4].mxu1 }
  0xec   :  { %v810_v41 = vmax.f32 %v746_v35, 0.0  ;;  %v842_v42 = vmax.f32 %v778_v36, 0.0  ;;  %v677_v43 = vmul.f32 %v1095_v39, %v1503_v9  ;;  %v709_v44 = vmul.f32 %v1143_v40, %v1503_v9  ;;  %v366_v45 = vpop.f32.mrb[5].mxu0  ;;  %v526_v46 = vpop.f32.mrb[5].mxu1 }
  0xed   :  { %v809_v47 = vmax.f32 %v745_v37, 0.0  ;;  %v841_v48 = vmax.f32 %v777_v38, 0.0  ;;  %v676_v49 = vmul.f32 %v1503_v9, %v366_v45  ;;  %v708_v50 = vmul.f32 %v1503_v9, %v526_v46 }
  0xee   :  { %874 = vst [vmem:[%s1834_s4 + $0x18] sm:$0xff] %v810_v41  ;;  %906 = vst [vmem:[%s1834_s4 + $0x118] sm:$0xff] %v842_v42  ;;  %v748_v51 = vadd.f32 %v1508_v11, %v677_v43  ;;  %v780_v52 = vadd.f32 %v1508_v11, %v709_v44 }
  0xef   :  { %873 = vst [vmem:[%s1834_s4 + $0x10] sm:$0xff] %v809_v47  ;;  %905 = vst [vmem:[%s1834_s4 + $0x110] sm:$0xff] %v841_v48  ;;  %v747_v53 = vadd.f32 %v1508_v11, %v676_v49  ;;  %v779_v54 = vadd.f32 %v1508_v11, %v708_v50  ;;  %v1098_v55 = vpop.f32.mrb[6].mxu0  ;;  %v1146_v56 = vpop.f32.mrb[6].mxu1 }
  0xf0   :  { %v812_v57 = vmax.f32 %v748_v51, 0.0  ;;  %v844_v58 = vmax.f32 %v780_v52, 0.0  ;;  %v679_v59 = vmul.f32 %v1098_v55, %v1503_v9  ;;  %v711_v60 = vmul.f32 %v1146_v56, %v1503_v9  ;;  %v376_v61 = vpop.f32.mrb[7].mxu0  ;;  %v536_v62 = vpop.f32.mrb[7].mxu1 }
  0xf1   :  { %v811_v63 = vmax.f32 %v747_v53, 0.0  ;;  %v843_v0 = vmax.f32 %v779_v54, 0.0  ;;  %v678_v1 = vmul.f32 %v1503_v9, %v376_v61  ;;  %v710_v2 = vmul.f32 %v1503_v9, %v536_v62 }
  0xf2   :  { %876 = vst [vmem:[%s1834_s4 + $0x28] sm:$0xff] %v812_v57  ;;  %908 = vst [vmem:[%s1834_s4 + $0x128] sm:$0xff] %v844_v58  ;;  %v750_v3 = vadd.f32 %v1508_v11, %v679_v59  ;;  %v782_v4 = vadd.f32 %v1508_v11, %v711_v60 }
  0xf3   :  { %875 = vst [vmem:[%s1834_s4 + $0x20] sm:$0xff] %v811_v63  ;;  %907 = vst [vmem:[%s1834_s4 + $0x120] sm:$0xff] %v843_v0  ;;  %v749_v5 = vadd.f32 %v1508_v11, %v678_v1  ;;  %v781_v6 = vadd.f32 %v1508_v11, %v710_v2  ;;  %v1101_v7 = vpop.f32.mrb[8].mxu0  ;;  %v1149_v8 = vpop.f32.mrb[8].mxu1 }
  0xf4   :  { %v814_v10 = vmax.f32 %v750_v3, 0.0  ;;  %v846_v12 = vmax.f32 %v782_v4, 0.0  ;;  %v681_v13 = vmul.f32 %v1101_v7, %v1503_v9  ;;  %v713_v14 = vmul.f32 %v1149_v8, %v1503_v9  ;;  %v386_v15 = vpop.f32.mrb[9].mxu0  ;;  %v546_v16 = vpop.f32.mrb[9].mxu1 }
  0xf5   :  { %v813_v17 = vmax.f32 %v749_v5, 0.0  ;;  %v845_v18 = vmax.f32 %v781_v6, 0.0  ;;  %v680_v19 = vmul.f32 %v1503_v9, %v386_v15  ;;  %v712_v20 = vmul.f32 %v1503_v9, %v546_v16 }
  0xf6   :  { %878 = vst [vmem:[%s1834_s4 + $0x38] sm:$0xff] %v814_v10  ;;  %910 = vst [vmem:[%s1834_s4 + $0x138] sm:$0xff] %v846_v12  ;;  %v752_v21 = vadd.f32 %v1508_v11, %v681_v13  ;;  %v784_v22 = vadd.f32 %v1508_v11, %v713_v14 }
  0xf7   :  { %877 = vst [vmem:[%s1834_s4 + $0x30] sm:$0xff] %v813_v17  ;;  %909 = vst [vmem:[%s1834_s4 + $0x130] sm:$0xff] %v845_v18  ;;  %v751_v23 = vadd.f32 %v1508_v11, %v680_v19  ;;  %v783_v24 = vadd.f32 %v1508_v11, %v712_v20  ;;  %v1104_v25 = vpop.f32.mrb[10].mxu0  ;;  %v1152_v26 = vpop.f32.mrb[10].mxu1 }
  0xf8   :  { %v816_v27 = vmax.f32 %v752_v21, 0.0  ;;  %v848_v28 = vmax.f32 %v784_v22, 0.0  ;;  %v683_v29 = vmul.f32 %v1104_v25, %v1503_v9  ;;  %v715_v30 = vmul.f32 %v1152_v26, %v1503_v9  ;;  %v396_v31 = vpop.f32.mrb[11].mxu0  ;;  %v556_v32 = vpop.f32.mrb[11].mxu1 }
  0xf9   :  { %v815_v33 = vmax.f32 %v751_v23, 0.0  ;;  %v847_v34 = vmax.f32 %v783_v24, 0.0  ;;  %v682_v35 = vmul.f32 %v1503_v9, %v396_v31  ;;  %v714_v36 = vmul.f32 %v1503_v9, %v556_v32 }
  0xfa   :  { %880 = vst [vmem:[%s1834_s4 + $0x48] sm:$0xff] %v816_v27  ;;  %912 = vst [vmem:[%s1834_s4 + $0x148] sm:$0xff] %v848_v28  ;;  %v754_v37 = vadd.f32 %v1508_v11, %v683_v29  ;;  %v786_v38 = vadd.f32 %v1508_v11, %v715_v30 }
  0xfb   :  { %879 = vst [vmem:[%s1834_s4 + $0x40] sm:$0xff] %v815_v33  ;;  %911 = vst [vmem:[%s1834_s4 + $0x140] sm:$0xff] %v847_v34  ;;  %v753_v39 = vadd.f32 %v1508_v11, %v682_v35  ;;  %v785_v40 = vadd.f32 %v1508_v11, %v714_v36  ;;  %v1107_v41 = vpop.f32.mrb[12].mxu0  ;;  %v1155_v42 = vpop.f32.mrb[12].mxu1 }
  0xfc   :  { %v818_v43 = vmax.f32 %v754_v37, 0.0  ;;  %v850_v44 = vmax.f32 %v786_v38, 0.0  ;;  %v685_v45 = vmul.f32 %v1107_v41, %v1503_v9  ;;  %v717_v46 = vmul.f32 %v1155_v42, %v1503_v9  ;;  %v406_v47 = vpop.f32.mrb[13].mxu0  ;;  %v566_v48 = vpop.f32.mrb[13].mxu1 }
  0xfd   :  { %v817_v49 = vmax.f32 %v753_v39, 0.0  ;;  %v849_v50 = vmax.f32 %v785_v40, 0.0  ;;  %v684_v51 = vmul.f32 %v1503_v9, %v406_v47  ;;  %v716_v52 = vmul.f32 %v1503_v9, %v566_v48 }
  0xfe   :  { %882 = vst [vmem:[%s1834_s4 + $0x58] sm:$0xff] %v818_v43  ;;  %914 = vst [vmem:[%s1834_s4 + $0x158] sm:$0xff] %v850_v44  ;;  %v756_v53 = vadd.f32 %v1508_v11, %v685_v45  ;;  %v788_v54 = vadd.f32 %v1508_v11, %v717_v46 }
  0xff   :  { %881 = vst [vmem:[%s1834_s4 + $0x50] sm:$0xff] %v817_v49  ;;  %913 = vst [vmem:[%s1834_s4 + $0x150] sm:$0xff] %v849_v50  ;;  %v755_v55 = vadd.f32 %v1508_v11, %v684_v51  ;;  %v787_v56 = vadd.f32 %v1508_v11, %v716_v52  ;;  %v1110_v57 = vpop.f32.mrb[14].mxu0  ;;  %v1158_v58 = vpop.f32.mrb[14].mxu1 }
 0x100   :  { %v820_v59 = vmax.f32 %v756_v53, 0.0  ;;  %v852_v60 = vmax.f32 %v788_v54, 0.0  ;;  %v687_v61 = vmul.f32 %v1110_v57, %v1503_v9  ;;  %v719_v62 = vmul.f32 %v1158_v58, %v1503_v9  ;;  %v416_v63 = vpop.f32.mrb[15].mxu0  ;;  %v576_v0 = vpop.f32.mrb[15].mxu1 }
 0x101   :  { %v819_v1 = vmax.f32 %v755_v55, 0.0  ;;  %v851_v2 = vmax.f32 %v787_v56, 0.0  ;;  %v686_v3 = vmul.f32 %v1503_v9, %v416_v63  ;;  %v718_v4 = vmul.f32 %v1503_v9, %v576_v0 }
 0x102   :  { %884 = vst [vmem:[%s1834_s4 + $0x68] sm:$0xff] %v820_v59  ;;  %916 = vst [vmem:[%s1834_s4 + $0x168] sm:$0xff] %v852_v60  ;;  %v758_v5 = vadd.f32 %v1508_v11, %v687_v61  ;;  %v790_v6 = vadd.f32 %v1508_v11, %v719_v62 }
 0x103   :  { %883 = vst [vmem:[%s1834_s4 + $0x60] sm:$0xff] %v819_v1  ;;  %915 = vst [vmem:[%s1834_s4 + $0x160] sm:$0xff] %v851_v2  ;;  %v757_v7 = vadd.f32 %v1508_v11, %v686_v3  ;;  %v789_v8 = vadd.f32 %v1508_v11, %v718_v4  ;;  %v1113_v10 = vpop.f32.mrb[16].mxu0  ;;  %v1161_v12 = vpop.f32.mrb[16].mxu1 }
 0x104   :  { %v822_v13 = vmax.f32 %v758_v5, 0.0  ;;  %v854_v14 = vmax.f32 %v790_v6, 0.0  ;;  %v689_v15 = vmul.f32 %v1113_v10, %v1503_v9  ;;  %v721_v16 = vmul.f32 %v1161_v12, %v1503_v9  ;;  %v426_v17 = vpop.f32.mrb[17].mxu0  ;;  %v586_v18 = vpop.f32.mrb[17].mxu1 }
 0x105   :  { %v821_v19 = vmax.f32 %v757_v7, 0.0  ;;  %v853_v20 = vmax.f32 %v789_v8, 0.0  ;;  %v688_v21 = vmul.f32 %v1503_v9, %v426_v17  ;;  %v720_v22 = vmul.f32 %v1503_v9, %v586_v18 }
 0x106   :  { %886 = vst [vmem:[%s1834_s4 + $0x78] sm:$0xff] %v822_v13  ;;  %918 = vst [vmem:[%s1834_s4 + $0x178] sm:$0xff] %v854_v14  ;;  %v760_v23 = vadd.f32 %v1508_v11, %v689_v15  ;;  %v792_v24 = vadd.f32 %v1508_v11, %v721_v16 }
 0x107   :  { %885 = vst [vmem:[%s1834_s4 + $0x70] sm:$0xff] %v821_v19  ;;  %917 = vst [vmem:[%s1834_s4 + $0x170] sm:$0xff] %v853_v20  ;;  %v759_v25 = vadd.f32 %v1508_v11, %v688_v21  ;;  %v791_v26 = vadd.f32 %v1508_v11, %v720_v22  ;;  %v1116_v27 = vpop.f32.mrb[18].mxu0  ;;  %v1164_v28 = vpop.f32.mrb[18].mxu1 }
 0x108   :  { %v824_v29 = vmax.f32 %v760_v23, 0.0  ;;  %v856_v30 = vmax.f32 %v792_v24, 0.0  ;;  %v691_v31 = vmul.f32 %v1116_v27, %v1503_v9  ;;  %v723_v32 = vmul.f32 %v1164_v28, %v1503_v9  ;;  %v436_v33 = vpop.f32.mrb[19].mxu0  ;;  %v596_v34 = vpop.f32.mrb[19].mxu1 }
 0x109   :  { %v823_v35 = vmax.f32 %v759_v25, 0.0  ;;  %v855_v36 = vmax.f32 %v791_v26, 0.0  ;;  %v690_v37 = vmul.f32 %v1503_v9, %v436_v33  ;;  %v722_v38 = vmul.f32 %v1503_v9, %v596_v34 }
 0x10a   :  { %888 = vst [vmem:[%s1834_s4 + $0x88] sm:$0xff] %v824_v29  ;;  %920 = vst [vmem:[%s1834_s4 + $0x188] sm:$0xff] %v856_v30  ;;  %v762_v39 = vadd.f32 %v1508_v11, %v691_v31  ;;  %v794_v40 = vadd.f32 %v1508_v11, %v723_v32 }
 0x10b   :  { %887 = vst [vmem:[%s1834_s4 + $0x80] sm:$0xff] %v823_v35  ;;  %919 = vst [vmem:[%s1834_s4 + $0x180] sm:$0xff] %v855_v36  ;;  %v761_v41 = vadd.f32 %v1508_v11, %v690_v37  ;;  %v793_v42 = vadd.f32 %v1508_v11, %v722_v38  ;;  %v1119_v43 = vpop.f32.mrb[20].mxu0  ;;  %v1167_v44 = vpop.f32.mrb[20].mxu1 }
 0x10c   :  { %v826_v45 = vmax.f32 %v762_v39, 0.0  ;;  %v858_v46 = vmax.f32 %v794_v40, 0.0  ;;  %v693_v47 = vmul.f32 %v1119_v43, %v1503_v9  ;;  %v725_v48 = vmul.f32 %v1167_v44, %v1503_v9  ;;  %v446_v49 = vpop.f32.mrb[21].mxu0  ;;  %v606_v50 = vpop.f32.mrb[21].mxu1 }
 0x10d   :  { %v825_v51 = vmax.f32 %v761_v41, 0.0  ;;  %v857_v52 = vmax.f32 %v793_v42, 0.0  ;;  %v692_v53 = vmul.f32 %v1503_v9, %v446_v49  ;;  %v724_v54 = vmul.f32 %v1503_v9, %v606_v50 }
 0x10e   :  { %890 = vst [vmem:[%s1834_s4 + $0x98] sm:$0xff] %v826_v45  ;;  %922 = vst [vmem:[%s1834_s4 + $0x198] sm:$0xff] %v858_v46  ;;  %v764_v55 = vadd.f32 %v1508_v11, %v693_v47  ;;  %v796_v56 = vadd.f32 %v1508_v11, %v725_v48 }
 0x10f   :  { %889 = vst [vmem:[%s1834_s4 + $0x90] sm:$0xff] %v825_v51  ;;  %921 = vst [vmem:[%s1834_s4 + $0x190] sm:$0xff] %v857_v52  ;;  %v763_v57 = vadd.f32 %v1508_v11, %v692_v53  ;;  %v795_v58 = vadd.f32 %v1508_v11, %v724_v54  ;;  %v1122_v59 = vpop.f32.mrb[22].mxu0  ;;  %v1170_v60 = vpop.f32.mrb[22].mxu1 }
 0x110   :  { %v828_v61 = vmax.f32 %v764_v55, 0.0  ;;  %v860_v62 = vmax.f32 %v796_v56, 0.0  ;;  %v695_v63 = vmul.f32 %v1122_v59, %v1503_v9  ;;  %v727_v0 = vmul.f32 %v1170_v60, %v1503_v9  ;;  %v456_v1 = vpop.f32.mrb[23].mxu0  ;;  %v616_v2 = vpop.f32.mrb[23].mxu1 }
 0x111   :  { %v827_v3 = vmax.f32 %v763_v57, 0.0  ;;  %v859_v4 = vmax.f32 %v795_v58, 0.0  ;;  %v694_v5 = vmul.f32 %v1503_v9, %v456_v1  ;;  %v726_v6 = vmul.f32 %v1503_v9, %v616_v2 }
 0x112   :  { %892 = vst [vmem:[%s1834_s4 + $0xa8] sm:$0xff] %v828_v61  ;;  %924 = vst [vmem:[%s1834_s4 + $0x1a8] sm:$0xff] %v860_v62  ;;  %v766_v7 = vadd.f32 %v1508_v11, %v695_v63  ;;  %v798_v8 = vadd.f32 %v1508_v11, %v727_v0 }
 0x113   :  { %891 = vst [vmem:[%s1834_s4 + $0xa0] sm:$0xff] %v827_v3  ;;  %923 = vst [vmem:[%s1834_s4 + $0x1a0] sm:$0xff] %v859_v4  ;;  %v765_v10 = vadd.f32 %v1508_v11, %v694_v5  ;;  %v797_v12 = vadd.f32 %v1508_v11, %v726_v6  ;;  %v1125_v13 = vpop.f32.mrb[24].mxu0  ;;  %v1173_v14 = vpop.f32.mrb[24].mxu1 }
 0x114   :  { %v830_v15 = vmax.f32 %v766_v7, 0.0  ;;  %v862_v16 = vmax.f32 %v798_v8, 0.0  ;;  %v697_v17 = vmul.f32 %v1125_v13, %v1503_v9  ;;  %v729_v18 = vmul.f32 %v1173_v14, %v1503_v9  ;;  %v466_v19 = vpop.f32.mrb[25].mxu0  ;;  %v626_v20 = vpop.f32.mrb[25].mxu1 }
 0x115   :  { %v829_v21 = vmax.f32 %v765_v10, 0.0  ;;  %v861_v22 = vmax.f32 %v797_v12, 0.0  ;;  %v696_v23 = vmul.f32 %v1503_v9, %v466_v19  ;;  %v728_v24 = vmul.f32 %v1503_v9, %v626_v20 }
 0x116   :  { %894 = vst [vmem:[%s1834_s4 + $0xb8] sm:$0xff] %v830_v15  ;;  %926 = vst [vmem:[%s1834_s4 + $0x1b8] sm:$0xff] %v862_v16  ;;  %v768_v25 = vadd.f32 %v1508_v11, %v697_v17  ;;  %v800_v26 = vadd.f32 %v1508_v11, %v729_v18 }
 0x117   :  { %893 = vst [vmem:[%s1834_s4 + $0xb0] sm:$0xff] %v829_v21  ;;  %925 = vst [vmem:[%s1834_s4 + $0x1b0] sm:$0xff] %v861_v22  ;;  %v767_v27 = vadd.f32 %v1508_v11, %v696_v23  ;;  %v799_v28 = vadd.f32 %v1508_v11, %v728_v24  ;;  %v1128_v29 = vpop.f32.mrb[26].mxu0  ;;  %v1176_v30 = vpop.f32.mrb[26].mxu1 }
 0x118   :  { %v832_v31 = vmax.f32 %v768_v25, 0.0  ;;  %v864_v32 = vmax.f32 %v800_v26, 0.0  ;;  %v699_v33 = vmul.f32 %v1128_v29, %v1503_v9  ;;  %v731_v34 = vmul.f32 %v1176_v30, %v1503_v9  ;;  %v476_v35 = vpop.f32.mrb[27].mxu0  ;;  %v636_v36 = vpop.f32.mrb[27].mxu1 }
 0x119   :  { %v831_v37 = vmax.f32 %v767_v27, 0.0  ;;  %v863_v38 = vmax.f32 %v799_v28, 0.0  ;;  %v698_v39 = vmul.f32 %v1503_v9, %v476_v35  ;;  %v730_v40 = vmul.f32 %v1503_v9, %v636_v36 }
 0x11a   :  { %896 = vst [vmem:[%s1834_s4 + $0xc8] sm:$0xff] %v832_v31  ;;  %928 = vst [vmem:[%s1834_s4 + $0x1c8] sm:$0xff] %v864_v32  ;;  %v770_v41 = vadd.f32 %v1508_v11, %v699_v33  ;;  %v802_v42 = vadd.f32 %v1508_v11, %v731_v34 }
 0x11b   :  { %895 = vst [vmem:[%s1834_s4 + $0xc0] sm:$0xff] %v831_v37  ;;  %927 = vst [vmem:[%s1834_s4 + $0x1c0] sm:$0xff] %v863_v38  ;;  %v769_v43 = vadd.f32 %v1508_v11, %v698_v39  ;;  %v801_v44 = vadd.f32 %v1508_v11, %v730_v40  ;;  %v1131_v45 = vpop.f32.mrb[28].mxu0  ;;  %v1179_v46 = vpop.f32.mrb[28].mxu1 }
 0x11c   :  { %v834_v47 = vmax.f32 %v770_v41, 0.0  ;;  %v866_v48 = vmax.f32 %v802_v42, 0.0  ;;  %v701_v49 = vmul.f32 %v1131_v45, %v1503_v9  ;;  %v733_v50 = vmul.f32 %v1179_v46, %v1503_v9  ;;  %v486_v51 = vpop.f32.mrb[29].mxu0  ;;  %v646_v52 = vpop.f32.mrb[29].mxu1 }
 0x11d   :  { %v833_v53 = vmax.f32 %v769_v43, 0.0  ;;  %v865_v54 = vmax.f32 %v801_v44, 0.0  ;;  %v700_v55 = vmul.f32 %v1503_v9, %v486_v51  ;;  %v732_v56 = vmul.f32 %v1503_v9, %v646_v52 }
 0x11e   :  { %898 = vst [vmem:[%s1834_s4 + $0xd8] sm:$0xff] %v834_v47  ;;  %930 = vst [vmem:[%s1834_s4 + $0x1d8] sm:$0xff] %v866_v48  ;;  %v772_v57 = vadd.f32 %v1508_v11, %v701_v49  ;;  %v804_v58 = vadd.f32 %v1508_v11, %v733_v50 }
 0x11f   :  { %897 = vst [vmem:[%s1834_s4 + $0xd0] sm:$0xff] %v833_v53  ;;  %929 = vst [vmem:[%s1834_s4 + $0x1d0] sm:$0xff] %v865_v54  ;;  %v771_v59 = vadd.f32 %v1508_v11, %v700_v55  ;;  %v803_v60 = vadd.f32 %v1508_v11, %v732_v56  ;;  %v1134_v61 = vpop.f32.mrb[30].mxu0  ;;  %v1182_v62 = vpop.f32.mrb[30].mxu1 }
 0x120   :  { %v836_v63 = vmax.f32 %v772_v57, 0.0  ;;  %v868_v0 = vmax.f32 %v804_v58, 0.0  ;;  %v703_v1 = vmul.f32 %v1134_v61, %v1503_v9  ;;  %v735_v2 = vmul.f32 %v1182_v62, %v1503_v9  ;;  %v496_v3 = vpop.f32.mrb[31].mxu0  ;;  %v656_v4 = vpop.f32.mrb[31].mxu1 }
 0x121   :  { %v835_v5 = vmax.f32 %v771_v59, 0.0  ;;  %v867_v6 = vmax.f32 %v803_v60, 0.0  ;;  %v702_v7 = vmul.f32 %v1503_v9, %v496_v3  ;;  %v734_v8 = vmul.f32 %v1503_v9, %v656_v4 }
 0x122   :  { %900 = vst [vmem:[%s1834_s4 + $0xe8] sm:$0xff] %v836_v63  ;;  %932 = vst [vmem:[%s1834_s4 + $0x1e8] sm:$0xff] %v868_v0  ;;  %v774_v10 = vadd.f32 %v1508_v11, %v703_v1  ;;  %v806_v12 = vadd.f32 %v1508_v11, %v735_v2 }
 0x123   :  { %899 = vst [vmem:[%s1834_s4 + $0xe0] sm:$0xff] %v835_v5  ;;  %931 = vst [vmem:[%s1834_s4 + $0x1e0] sm:$0xff] %v867_v6  ;;  %v773_v9 = vadd.f32 %v1508_v11, %v702_v7  ;;  %v805_v13 = vadd.f32 %v1508_v11, %v734_v8 }
 0x124   :  { %v838_v14 = vmax.f32 %v774_v10, 0.0  ;;  %v870_v15 = vmax.f32 %v806_v12, 0.0 }
 0x125   :  { %v837_v16 = vmax.f32 %v773_v9, 0.0  ;;  %v869_v17 = vmax.f32 %v805_v13, 0.0 }
 0x126   :  { %902 = vst [vmem:[%s1834_s4 + $0xf8] sm:$0xff] %v838_v14  ;;  %934 = vst [vmem:[%s1834_s4 + $0x1f8] sm:$0xff] %v870_v15 }
 0x127   :  { %901 = vst [vmem:[%s1834_s4 + $0xf0] sm:$0xff] %v837_v16  ;;  %933 = vst [vmem:[%s1834_s4 + $0x1f0] sm:$0xff] %v869_v17 }

</bundles_post_ra>
